<compile_context>
chip_gen: v7x
topology: tpu7x:2x2x1
jax: 0.10.0
libtpu: 0.0.40
codegen_flags: <defaults>
</compile_context>

<pallas_src>
import functools

import jax
import jax.numpy as jnp
import numpy as np
from jax.experimental import pallas as pl
from jax.experimental.pallas import tpu as pltpu


# ----------------------------------------------------------------------------
# Pallas kernel: one tile of packed points.
# ----------------------------------------------------------------------------
def _cc_kernel(rel_ref, nf_ref, w1_ref, b1_ref, w2_ref, b2_ref, out_ref, *, K, tile):
    """
    rel_ref: (K, tile, p*3)  compute dtype (bf16 perf path / f32 validation path)
    nf_ref : (K, tile, p*C)  compute dtype
    w1_ref : (p*3, p*C)      kron(I_p, W1), compute dtype
    b1_ref : (1, p*C)        f32
    w2_ref : (p*C, p*C)      kron(I_p, W2), compute dtype
    b2_ref : (1, p*C)        f32
    out_ref: (tile, p*C)
    """
    pc3 = rel_ref.shape[-1]
    cdt = w2_ref.dtype

    # Hoisted matmuls: all K neighbor blocks go through the MLP as two long MXU calls
    # (bf16 operands, f32 accumulation on the perf path).
    rel = rel_ref[...].reshape(K * tile, pc3)
    h = jnp.dot(rel, w1_ref[...], preferred_element_type=jnp.float32)
    h = jnp.maximum(h + b1_ref[...], 0.0).astype(cdt)
    wgt = jnp.dot(h, w2_ref[...], preferred_element_type=jnp.float32) + b2_ref[...]

    # K reduction: unrolled, contiguous lane-dense FMAs in f32.
    acc = wgt[0:tile] * nf_ref[0].astype(jnp.float32)
    for k in range(1, K):
        acc = acc + wgt[k * tile:(k + 1) * tile] * nf_ref[k].astype(jnp.float32)
    out_ref[...] = acc.astype(out_ref.dtype)


# ----------------------------------------------------------------------------
# Packing / tiling helpers.
# ----------------------------------------------------------------------------
def _pack_factor(C):
    """Points folded into one lane row: fill 256 lanes on v6e/v7x, 128 elsewhere."""
    if C > 128 or 128 % C != 0:
        # TODO(synk): C not dividing 128 falls back to lane-sparse (masked-store) rows.
        return 1
    try:
        kind = jax.devices()[0].device_kind.lower()
    except Exception:
        kind = ""
    wide = ("v6" in kind) or ("v7" in kind) or ("7x" in kind)
    lanes = 256 if wide else 128
    return lanes // C


def _choose_tile(Mp, max_tile=512, min_steps=2):
    """Tile of packed rows: multiple of 16, <= max_tile, aiming for >= min_steps grid steps."""
    t = min(max_tile, max(16, -(-Mp // min_steps)))
    return max(16, (t // 16) * 16)


def _pack_kmajor(x, M_pad, p):
    """(M, K, d) -> zero-pad rows to M_pad -> (K, M_pad // p, p*d) (K-major, lane-dense)."""
    M, K, d = x.shape
    if M_pad > M:
        x = jnp.pad(x, ((0, M_pad - M), (0, 0), (0, 0)))
    return jnp.transpose(x, (1, 0, 2)).reshape(K, M_pad // p, p * d)


def _mask_to_indices(flat_mask, n_points):
    """Row-major indices of the True pixels per image (exactly n_points True per image)."""
    B, HW = flat_mask.shape
    rank = jnp.cumsum(flat_mask.astype(jnp.int32), axis=1) - 1
    dest = jnp.where(flat_mask, rank, n_points)          # OOB for False pixels -> dropped
    src = jnp.broadcast_to(jnp.arange(HW, dtype=jnp.int32), (B, HW))
    return jnp.zeros((B, n_points), jnp.int32).at[
        jnp.arange(B)[:, None], dest].set(src, mode="drop")


# ----------------------------------------------------------------------------
# One ContinuousConvolution layer (wrapper: gather + packing + pallas_call).
# ----------------------------------------------------------------------------
def _continuous_convolution(feats_pts, idx_flat, rel_packed, W1, b1, W2, b2, *,
                            p, tile, M_pad, stream_dtype, out_dtype):
    B, N, C = feats_pts.shape
    K = rel_packed.shape[0]
    M = B * N
    Mp = M_pad // p
    pc = p * C

    # KNN feature gather in the (cheap) stream dtype, repacked K-major & lane-dense.
    # TODO(synk): fuse this gather into the kernel (scalar-prefetch indices + per-tile DMA
    # gather from an HBM feature table) to remove the K-expanded HBM array entirely.
    feats_pts = feats_pts.astype(stream_dtype)
    nn_feats = jnp.take_along_axis(feats_pts, idx_flat[..., None], axis=1)
    nf = _pack_kmajor(nn_feats.reshape(M, K, C), M_pad, p)

    # Block-diagonal ("packed") weights: p independent points per lane row.
    eye = jnp.eye(p, dtype=jnp.float32)
    W1b = jnp.kron(eye, W1.astype(jnp.float32)).astype(stream_dtype)   # (p*3, p*C)
    W2b = jnp.kron(eye, W2.astype(jnp.float32)).astype(stream_dtype)   # (p*C, p*C)
    b1b = jnp.tile(b1.astype(jnp.float32), p).reshape(1, pc)
    b2b = jnp.tile(b2.astype(jnp.float32), p).reshape(1, pc)

    grid = (Mp // tile,)
    rows = K * Mp
    flops = 2 * rows * (3 * p * pc + pc * pc) + 3 * rows * pc
    bytes_accessed = (rel_packed.size * rel_packed.dtype.itemsize
                      + nf.size * nf.dtype.itemsize
                      + Mp * pc * jnp.dtype(out_dtype).itemsize
                      + (W1b.size + W2b.size) * jnp.dtype(stream_dtype).itemsize
                      + 2 * pc * 4)

    out = pl.pallas_call(
        functools.partial(_cc_kernel, K=K, tile=tile),
        out_shape=jax.ShapeDtypeStruct((Mp, pc), out_dtype),
        grid=grid,
        in_specs=[
            pl.BlockSpec((K, tile, p * 3), lambda i: (0, i, 0)),   # rel, K-major
            pl.BlockSpec((K, tile, pc), lambda i: (0, i, 0)),      # neighbor feats, K-major
            pl.BlockSpec((p * 3, pc), lambda i: (0, 0)),           # W1b (VMEM-resident)
            pl.BlockSpec((1, pc), lambda i: (0, 0)),               # b1b
            pl.BlockSpec((pc, pc), lambda i: (0, 0)),              # W2b
            pl.BlockSpec((1, pc), lambda i: (0, 0)),               # b2b
        ],
        out_specs=pl.BlockSpec((tile, pc), lambda i: (i, 0)),
        compiler_params=pltpu.CompilerParams(
            dimension_semantics=("parallel",),
            vmem_limit_bytes=32 * 1024 * 1024),
        cost_estimate=pl.CostEstimate(
            flops=flops, transcendentals=0, bytes_accessed=bytes_accessed),
    )(rel_packed, nf, W1b, b1b, W2b, b2b)

    return out.reshape(M_pad, C)[:M].reshape(B, N, C)


# ----------------------------------------------------------------------------
# Three_D_Branch forward
# ----------------------------------------------------------------------------
def three_d_branch(feats, mask, coors, indices, params, *,
                   feats_dtype=jnp.bfloat16, max_tile=512):
    """
    feats:   (B, C, H, W) float32
    mask:    (B, H, W)    bool   (must have exactly N True entries per image)
    coors:   (B, N, 3)    float32
    indices: (B, N, K)    int32
    params:  ((W1, b1, W2, b2), (W1, b1, W2, b2))
    """
    B, C, H, W = feats.shape
    N = coors.shape[1]
    K = indices.shape[-1]
    M = B * N

    p = _pack_factor(C)
    Mp0 = -(-M // p)
    tile = _choose_tile(Mp0, max_tile=max_tile)
    Mp_pad = -(-Mp0 // tile) * tile
    M_pad = Mp_pad * p

    # feats.permute(0,2,3,1)[mask].view(B, -1, C) via cumsum-compaction (no argsort).
    feats_perm = jnp.transpose(feats, (0, 2, 3, 1)).reshape(B, H * W, C)
    flat_mask = mask.reshape(B, H * W)
    pix_idx = _mask_to_indices(flat_mask, N)
    feats_mask = jnp.take_along_axis(feats_perm, pix_idx[..., None], axis=1)

    # Relative neighbor coordinates (shared by both layers), K-major + lane-dense.
    idx_flat = indices.reshape(B, N * K).astype(jnp.int32)
    nn_coors = jnp.take_along_axis(coors, idx_flat[..., None], axis=1).reshape(B, N, K, 3)
    rel = (nn_coors - coors[:, :, None, :]).reshape(M, K, 3)          # f32 subtraction
    rel_packed = _pack_kmajor(rel.astype(feats_dtype), M_pad, p)      # then quantize

    cc = functools.partial(_continuous_convolution, p=p, tile=tile, M_pad=M_pad,
                           stream_dtype=feats_dtype)
    # branch_3d_continuous = Sequential(ContinuousConvolution, ContinuousConvolution)
    h = cc(feats_mask, idx_flat, rel_packed, *params[0], out_dtype=feats_dtype)
    h = cc(h, idx_flat, rel_packed, *params[1], out_dtype=jnp.float32)

    # out = zeros_like(...); out[mask] = br_3d; permute back to NCHW.
    out_flat = jnp.zeros((B, H * W, C), feats.dtype)
    out_flat = out_flat.at[jnp.arange(B)[:, None], pix_idx].set(h.astype(feats.dtype))
    return jnp.transpose(out_flat.reshape(B, H, W, C), (0, 3, 1, 2))


# ----------------------------------------------------------------------------
# Pure-JAX f32 reference (same math, no Pallas) for correctness checks.
# ----------------------------------------------------------------------------
def _cc_ref(feats_pts, coors, indices, W1, b1, W2, b2):
    B, N, C = feats_pts.shape
    K = indices.shape[-1]
    idx = indices.reshape(B, N * K)
    nf = jnp.take_along_axis(feats_pts, idx[..., None], axis=1).reshape(B, N, K, C)
    nc = jnp.take_along_axis(coors, idx[..., None], axis=1).reshape(B, N, K, 3)
    rel = nc - coors[:, :, None, :]
    w = jnp.maximum(rel @ W1 + b1, 0.0) @ W2 + b2
    return (w * nf).sum(axis=2)


def _branch_ref(feats, mask, coors, indices, params):
    B, C, H, W = feats.shape
    N = coors.shape[1]
    feats_perm = jnp.transpose(feats, (0, 2, 3, 1)).reshape(B, H * W, C)
    flat_mask = mask.reshape(B, H * W)
    pix_idx = _mask_to_indices(flat_mask, N)
    fm = jnp.take_along_axis(feats_perm, pix_idx[..., None], axis=1)
    h = _cc_ref(fm, coors, indices.astype(jnp.int32), *params[0])
    h = _cc_ref(h, coors, indices.astype(jnp.int32), *params[1])
    out_flat = jnp.zeros((B, H * W, C), feats.dtype)
    out_flat = out_flat.at[jnp.arange(B)[:, None], pix_idx].set(h)
    return jnp.transpose(out_flat.reshape(B, H, W, C), (0, 3, 1, 2))


if __name__ == "__main__":
    # Small shapes consistent with the module's forward (n_feat = C, k_number = K).
    B, C, H, W = 2, 32, 16, 16
    N = 64                          # masked points per batch element
    K = 8                           # knn neighbors

    key = jax.random.PRNGKey(0)
    k_feats, k_coors, k_idx, k_mask, k_p = jax.random.split(key, 5)

    feats = jax.random.normal(k_feats, (B, C, H, W), jnp.float32)
    coors = jax.random.normal(k_coors, (B, N, 3), jnp.float32)
    indices = jax.random.randint(k_idx, (B, N, K), 0, N, jnp.int32)

    # Deterministic mask with exactly N True pixels per batch element.
    mask_np = np.zeros((B, H * W), dtype=bool)
    for b in range(B):
        sel = np.asarray(jax.random.permutation(
            jax.random.fold_in(k_mask, b), H * W))[:N]
        mask_np[b, sel] = True
    mask = jnp.asarray(mask_np.reshape(B, H, W))

    # Deterministic parameters for the two ContinuousConvolution layers.
    def init_layer(k):
        k1, k2, k3, k4 = jax.random.split(k, 4)
        W1 = jax.random.normal(k1, (3, C), jnp.float32) * 0.3
        b1 = jax.random.normal(k2, (C,), jnp.float32) * 0.1
        W2 = jax.random.normal(k3, (C, C), jnp.float32) * (1.0 / np.sqrt(C))
        b2 = jax.random.normal(k4, (C,), jnp.float32) * 0.1
        return (W1, b1, W2, b2)

    kp1, kp2 = jax.random.split(k_p)
    params = (init_layer(kp1), init_layer(kp2))

    fwd = jax.jit(three_d_branch, static_argnames=("feats_dtype", "max_tile"))

    # Default (performance) path: bf16 feature/rel/weight streams, bf16 MXU, f32 accumulate.
    out_bf16 = jax.block_until_ready(fwd(feats, mask, coors, indices, params))
    assert out_bf16.shape == (B, C, H, W)

    # Full-f32 path for a tight numerical check against the reference.
    out_f32 = jax.block_until_ready(
        fwd(feats, mask, coors, indices, params, feats_dtype=jnp.float32))

    ref = jax.block_until_ready(_branch_ref(feats, mask, coors, indices, params))
    ref_np = np.asarray(ref, np.float32)
    np.testing.assert_allclose(np.asarray(out_f32), ref_np, rtol=1e-4, atol=1e-4)

    # Global relative-error check for the bf16 path (inputs/weights quantized to bf16).
    diff = np.asarray(out_bf16, np.float32) - ref_np
    rel_err = np.linalg.norm(diff) / (np.linalg.norm(ref_np) + 1e-6)
    assert rel_err < 5e-2, f"bf16 path relative error too large: {rel_err}"

    print("KERNEL_OK")
</pallas_src>

<mosaic_0001>
module attributes {stable_mosaic.version = 11 : i64} {
  func.func @_cc_kernel(%arg0: i32, %arg1: memref<8x16x12xbf16, #tpu.memory_space<vmem>>, %arg2: memref<8x16x128xbf16, #tpu.memory_space<vmem>>, %arg3: memref<12x128xbf16, #tpu.memory_space<vmem>>, %arg4: memref<1x128xf32, #tpu.memory_space<vmem>>, %arg5: memref<128x128xbf16, #tpu.memory_space<vmem>>, %arg6: memref<1x128xf32, #tpu.memory_space<vmem>>, %arg7: memref<16x128xbf16, #tpu.memory_space<vmem>>) attributes {dimension_semantics = [#tpu.dimension_semantics<parallel>], iteration_bounds = array<i64: 2>, scalar_prefetch = 0 : i64, scratch_operands = 0 : i64, tpu.core_type = #tpu.core_type<tc>, window_params = [{transform_indices = @transform_0, window_bounds = array<i64: 8, 16, 12>}, {transform_indices = @transform_1, window_bounds = array<i64: 8, 16, 128>}, {pipeline_mode = #tpu.pipeline_mode<synchronous>, transform_indices = @transform_2, window_bounds = array<i64: 12, 128>}, {pipeline_mode = #tpu.pipeline_mode<synchronous>, transform_indices = @transform_3, window_bounds = array<i64: 1, 128>}, {pipeline_mode = #tpu.pipeline_mode<synchronous>, transform_indices = @transform_4, window_bounds = array<i64: 128, 128>}, {pipeline_mode = #tpu.pipeline_mode<synchronous>, transform_indices = @transform_5, window_bounds = array<i64: 1, 128>}, {transform_indices = @transform_6, window_bounds = array<i64: 16, 128>}]} {
    %c0 = arith.constant 0 : index
    %c0_0 = arith.constant 0 : index
    %c0_1 = arith.constant 0 : index
    %0 = vector.load %arg1[%c0, %c0_0, %c0_1] : memref<8x16x12xbf16, #tpu.memory_space<vmem>>, vector<8x16x12xbf16>
    %1 = vector.shape_cast %0 : vector<8x16x12xbf16> to vector<128x12xbf16>
    %c0_2 = arith.constant 0 : index
    %c0_3 = arith.constant 0 : index
    %2 = vector.load %arg3[%c0_2, %c0_3] : memref<12x128xbf16, #tpu.memory_space<vmem>>, vector<12x128xbf16>
    %cst = arith.constant dense<0.000000e+00> : vector<128x128xf32>
    %3 = tpu.matmul %1, %2, %cst {dimension_numbers = #tpu.dot_dimension_numbers<[1], [0], [0], [1], [0, 0, 1, 1], [], []>} : vector<128x12xbf16>, vector<12x128xbf16>, vector<128x128xf32> -> vector<128x128xf32>
    %c0_4 = arith.constant 0 : index
    %c0_5 = arith.constant 0 : index
    %4 = vector.load %arg4[%c0_4, %c0_5] : memref<1x128xf32, #tpu.memory_space<vmem>>, vector<1x128xf32>
    %5 = vector.broadcast %4 : vector<1x128xf32> to vector<128x128xf32>
    %6 = arith.addf %3, %5 : vector<128x128xf32>
    %cst_6 = arith.constant 0.000000e+00 : f32
    %7 = vector.broadcast %cst_6 : f32 to vector<128x128xf32>
    %8 = arith.maximumf %6, %7 : vector<128x128xf32>
    %9 = arith.truncf %8 : vector<128x128xf32> to vector<128x128xbf16>
    %c0_7 = arith.constant 0 : index
    %c0_8 = arith.constant 0 : index
    %10 = vector.load %arg5[%c0_7, %c0_8] : memref<128x128xbf16, #tpu.memory_space<vmem>>, vector<128x128xbf16>
    %cst_9 = arith.constant dense<0.000000e+00> : vector<128x128xf32>
    %11 = tpu.matmul %9, %10, %cst_9 {dimension_numbers = #tpu.dot_dimension_numbers<[1], [0], [0], [1], [0, 0, 1, 1], [], []>} : vector<128x128xbf16>, vector<128x128xbf16>, vector<128x128xf32> -> vector<128x128xf32>
    %c0_10 = arith.constant 0 : index
    %c0_11 = arith.constant 0 : index
    %12 = vector.load %arg6[%c0_10, %c0_11] : memref<1x128xf32, #tpu.memory_space<vmem>>, vector<1x128xf32>
    %13 = vector.broadcast %12 : vector<1x128xf32> to vector<128x128xf32>
    %14 = arith.addf %11, %13 : vector<128x128xf32>
    %15 = vector.extract_strided_slice %14 {offsets = [0, 0], sizes = [16, 128], strides = [1, 1]} : vector<128x128xf32> to vector<16x128xf32>
    %c0_12 = arith.constant 0 : index
    %c0_13 = arith.constant 0 : index
    %c0_14 = arith.constant 0 : index
    %16 = vector.load %arg2[%c0_12, %c0_13, %c0_14] : memref<8x16x128xbf16, #tpu.memory_space<vmem>>, vector<1x16x128xbf16>
    %17 = vector.shape_cast %16 : vector<1x16x128xbf16> to vector<16x128xbf16>
    %18 = arith.extf %17 : vector<16x128xbf16> to vector<16x128xf32>
    %19 = arith.mulf %15, %18 : vector<16x128xf32>
    %20 = vector.extract_strided_slice %14 {offsets = [16, 0], sizes = [16, 128], strides = [1, 1]} : vector<128x128xf32> to vector<16x128xf32>
    %c1 = arith.constant 1 : index
    %c0_15 = arith.constant 0 : index
    %c0_16 = arith.constant 0 : index
    %21 = vector.load %arg2[%c1, %c0_15, %c0_16] : memref<8x16x128xbf16, #tpu.memory_space<vmem>>, vector<1x16x128xbf16>
    %22 = vector.shape_cast %21 : vector<1x16x128xbf16> to vector<16x128xbf16>
    %23 = arith.extf %22 : vector<16x128xbf16> to vector<16x128xf32>
    %24 = arith.mulf %20, %23 : vector<16x128xf32>
    %25 = arith.addf %19, %24 : vector<16x128xf32>
    %26 = vector.extract_strided_slice %14 {offsets = [32, 0], sizes = [16, 128], strides = [1, 1]} : vector<128x128xf32> to vector<16x128xf32>
    %c2 = arith.constant 2 : index
    %c0_17 = arith.constant 0 : index
    %c0_18 = arith.constant 0 : index
    %27 = vector.load %arg2[%c2, %c0_17, %c0_18] : memref<8x16x128xbf16, #tpu.memory_space<vmem>>, vector<1x16x128xbf16>
    %28 = vector.shape_cast %27 : vector<1x16x128xbf16> to vector<16x128xbf16>
    %29 = arith.extf %28 : vector<16x128xbf16> to vector<16x128xf32>
    %30 = arith.mulf %26, %29 : vector<16x128xf32>
    %31 = arith.addf %25, %30 : vector<16x128xf32>
    %32 = vector.extract_strided_slice %14 {offsets = [48, 0], sizes = [16, 128], strides = [1, 1]} : vector<128x128xf32> to vector<16x128xf32>
    %c3 = arith.constant 3 : index
    %c0_19 = arith.constant 0 : index
    %c0_20 = arith.constant 0 : index
    %33 = vector.load %arg2[%c3, %c0_19, %c0_20] : memref<8x16x128xbf16, #tpu.memory_space<vmem>>, vector<1x16x128xbf16>
    %34 = vector.shape_cast %33 : vector<1x16x128xbf16> to vector<16x128xbf16>
    %35 = arith.extf %34 : vector<16x128xbf16> to vector<16x128xf32>
    %36 = arith.mulf %32, %35 : vector<16x128xf32>
    %37 = arith.addf %31, %36 : vector<16x128xf32>
    %38 = vector.extract_strided_slice %14 {offsets = [64, 0], sizes = [16, 128], strides = [1, 1]} : vector<128x128xf32> to vector<16x128xf32>
    %c4 = arith.constant 4 : index
    %c0_21 = arith.constant 0 : index
    %c0_22 = arith.constant 0 : index
    %39 = vector.load %arg2[%c4, %c0_21, %c0_22] : memref<8x16x128xbf16, #tpu.memory_space<vmem>>, vector<1x16x128xbf16>
    %40 = vector.shape_cast %39 : vector<1x16x128xbf16> to vector<16x128xbf16>
    %41 = arith.extf %40 : vector<16x128xbf16> to vector<16x128xf32>
    %42 = arith.mulf %38, %41 : vector<16x128xf32>
    %43 = arith.addf %37, %42 : vector<16x128xf32>
    %44 = vector.extract_strided_slice %14 {offsets = [80, 0], sizes = [16, 128], strides = [1, 1]} : vector<128x128xf32> to vector<16x128xf32>
    %c5 = arith.constant 5 : index
    %c0_23 = arith.constant 0 : index
    %c0_24 = arith.constant 0 : index
    %45 = vector.load %arg2[%c5, %c0_23, %c0_24] : memref<8x16x128xbf16, #tpu.memory_space<vmem>>, vector<1x16x128xbf16>
    %46 = vector.shape_cast %45 : vector<1x16x128xbf16> to vector<16x128xbf16>
    %47 = arith.extf %46 : vector<16x128xbf16> to vector<16x128xf32>
    %48 = arith.mulf %44, %47 : vector<16x128xf32>
    %49 = arith.addf %43, %48 : vector<16x128xf32>
    %50 = vector.extract_strided_slice %14 {offsets = [96, 0], sizes = [16, 128], strides = [1, 1]} : vector<128x128xf32> to vector<16x128xf32>
    %c6 = arith.constant 6 : index
    %c0_25 = arith.constant 0 : index
    %c0_26 = arith.constant 0 : index
    %51 = vector.load %arg2[%c6, %c0_25, %c0_26] : memref<8x16x128xbf16, #tpu.memory_space<vmem>>, vector<1x16x128xbf16>
    %52 = vector.shape_cast %51 : vector<1x16x128xbf16> to vector<16x128xbf16>
    %53 = arith.extf %52 : vector<16x128xbf16> to vector<16x128xf32>
    %54 = arith.mulf %50, %53 : vector<16x128xf32>
    %55 = arith.addf %49, %54 : vector<16x128xf32>
    %56 = vector.extract_strided_slice %14 {offsets = [112, 0], sizes = [16, 128], strides = [1, 1]} : vector<128x128xf32> to vector<16x128xf32>
    %c7 = arith.constant 7 : index
    %c0_27 = arith.constant 0 : index
    %c0_28 = arith.constant 0 : index
    %57 = vector.load %arg2[%c7, %c0_27, %c0_28] : memref<8x16x128xbf16, #tpu.memory_space<vmem>>, vector<1x16x128xbf16>
    %58 = vector.shape_cast %57 : vector<1x16x128xbf16> to vector<16x128xbf16>
    %59 = arith.extf %58 : vector<16x128xbf16> to vector<16x128xf32>
    %60 = arith.mulf %56, %59 : vector<16x128xf32>
    %61 = arith.addf %55, %60 : vector<16x128xf32>
    %62 = arith.truncf %61 : vector<16x128xf32> to vector<16x128xbf16>
    %c0_29 = arith.constant 0 : index
    %c0_30 = arith.constant 0 : index
    %63 = vector.load %arg7[%c0_29, %c0_30] : memref<16x128xbf16, #tpu.memory_space<vmem>>, vector<16x128xbf16>
    tpu.vector_store %arg7[%c0_29, %c0_30], %62 {strides = array<i32>} : memref<16x128xbf16, #tpu.memory_space<vmem>>, vector<16x128xbf16>,
    return
  }
  func.func @transform_0(%arg0: i32) -> (i32, i32, i32) {
    %c0_i32 = arith.constant 0 : i32
    %c0_i32_0 = arith.constant 0 : i32
    %c0_i32_1 = arith.constant 0 : i32
    return %c0_i32, %arg0, %c0_i32_0 : i32, i32, i32
  }
  func.func @transform_1(%arg0: i32) -> (i32, i32, i32) {
    %c0_i32 = arith.constant 0 : i32
    %c0_i32_0 = arith.constant 0 : i32
    %c0_i32_1 = arith.constant 0 : i32
    return %c0_i32, %arg0, %c0_i32_0 : i32, i32, i32
  }
  func.func @transform_2(%arg0: i32) -> (i32, i32) {
    %c0_i32 = arith.constant 0 : i32
    %c0_i32_0 = arith.constant 0 : i32
    %c0_i32_1 = arith.constant 0 : i32
    return %c0_i32, %c0_i32_0 : i32, i32
  }
  func.func @transform_3(%arg0: i32) -> (i32, i32) {
    %c0_i32 = arith.constant 0 : i32
    %c0_i32_0 = arith.constant 0 : i32
    %c0_i32_1 = arith.constant 0 : i32
    return %c0_i32, %c0_i32_0 : i32, i32
  }
  func.func @transform_4(%arg0: i32) -> (i32, i32) {
    %c0_i32 = arith.constant 0 : i32
    %c0_i32_0 = arith.constant 0 : i32
    %c0_i32_1 = arith.constant 0 : i32
    return %c0_i32, %c0_i32_0 : i32, i32
  }
  func.func @transform_5(%arg0: i32) -> (i32, i32) {
    %c0_i32 = arith.constant 0 : i32
    %c0_i32_0 = arith.constant 0 : i32
    %c0_i32_1 = arith.constant 0 : i32
    return %c0_i32, %c0_i32_0 : i32, i32
  }
  func.func @transform_6(%arg0: i32) -> (i32, i32) {
    %c0_i32 = arith.constant 0 : i32
    %c0_i32_0 = arith.constant 0 : i32
    return %arg0, %c0_i32 : i32, i32
  }
}

module attributes {stable_mosaic.version = 11 : i64} {
  func.func @_cc_kernel(%arg0: i32, %arg1: memref<8x16x12xbf16, #tpu.memory_space<vmem>>, %arg2: memref<8x16x128xbf16, #tpu.memory_space<vmem>>, %arg3: memref<12x128xbf16, #tpu.memory_space<vmem>>, %arg4: memref<1x128xf32, #tpu.memory_space<vmem>>, %arg5: memref<128x128xbf16, #tpu.memory_space<vmem>>, %arg6: memref<1x128xf32, #tpu.memory_space<vmem>>, %arg7: memref<16x128xf32, #tpu.memory_space<vmem>>) attributes {dimension_semantics = [#tpu.dimension_semantics<parallel>], iteration_bounds = array<i64: 2>, scalar_prefetch = 0 : i64, scratch_operands = 0 : i64, tpu.core_type = #tpu.core_type<tc>, window_params = [{transform_indices = @transform_0, window_bounds = array<i64: 8, 16, 12>}, {transform_indices = @transform_1, window_bounds = array<i64: 8, 16, 128>}, {pipeline_mode = #tpu.pipeline_mode<synchronous>, transform_indices = @transform_2, window_bounds = array<i64: 12, 128>}, {pipeline_mode = #tpu.pipeline_mode<synchronous>, transform_indices = @transform_3, window_bounds = array<i64: 1, 128>}, {pipeline_mode = #tpu.pipeline_mode<synchronous>, transform_indices = @transform_4, window_bounds = array<i64: 128, 128>}, {pipeline_mode = #tpu.pipeline_mode<synchronous>, transform_indices = @transform_5, window_bounds = array<i64: 1, 128>}, {transform_indices = @transform_6, window_bounds = array<i64: 16, 128>}]} {
    %c0 = arith.constant 0 : index
    %c0_0 = arith.constant 0 : index
    %c0_1 = arith.constant 0 : index
    %0 = vector.load %arg1[%c0, %c0_0, %c0_1] : memref<8x16x12xbf16, #tpu.memory_space<vmem>>, vector<8x16x12xbf16>
    %1 = vector.shape_cast %0 : vector<8x16x12xbf16> to vector<128x12xbf16>
    %c0_2 = arith.constant 0 : index
    %c0_3 = arith.constant 0 : index
    %2 = vector.load %arg3[%c0_2, %c0_3] : memref<12x128xbf16, #tpu.memory_space<vmem>>, vector<12x128xbf16>
    %cst = arith.constant dense<0.000000e+00> : vector<128x128xf32>
    %3 = tpu.matmul %1, %2, %cst {dimension_numbers = #tpu.dot_dimension_numbers<[1], [0], [0], [1], [0, 0, 1, 1], [], []>} : vector<128x12xbf16>, vector<12x128xbf16>, vector<128x128xf32> -> vector<128x128xf32>
    %c0_4 = arith.constant 0 : index
    %c0_5 = arith.constant 0 : index
    %4 = vector.load %arg4[%c0_4, %c0_5] : memref<1x128xf32, #tpu.memory_space<vmem>>, vector<1x128xf32>
    %5 = vector.broadcast %4 : vector<1x128xf32> to vector<128x128xf32>
    %6 = arith.addf %3, %5 : vector<128x128xf32>
    %cst_6 = arith.constant 0.000000e+00 : f32
    %7 = vector.broadcast %cst_6 : f32 to vector<128x128xf32>
    %8 = arith.maximumf %6, %7 : vector<128x128xf32>
    %9 = arith.truncf %8 : vector<128x128xf32> to vector<128x128xbf16>
    %c0_7 = arith.constant 0 : index
    %c0_8 = arith.constant 0 : index
    %10 = vector.load %arg5[%c0_7, %c0_8] : memref<128x128xbf16, #tpu.memory_space<vmem>>, vector<128x128xbf16>
    %cst_9 = arith.constant dense<0.000000e+00> : vector<128x128xf32>
    %11 = tpu.matmul %9, %10, %cst_9 {dimension_numbers = #tpu.dot_dimension_numbers<[1], [0], [0], [1], [0, 0, 1, 1], [], []>} : vector<128x128xbf16>, vector<128x128xbf16>, vector<128x128xf32> -> vector<128x128xf32>
    %c0_10 = arith.constant 0 : index
    %c0_11 = arith.constant 0 : index
    %12 = vector.load %arg6[%c0_10, %c0_11] : memref<1x128xf32, #tpu.memory_space<vmem>>, vector<1x128xf32>
    %13 = vector.broadcast %12 : vector<1x128xf32> to vector<128x128xf32>
    %14 = arith.addf %11, %13 : vector<128x128xf32>
    %15 = vector.extract_strided_slice %14 {offsets = [0, 0], sizes = [16, 128], strides = [1, 1]} : vector<128x128xf32> to vector<16x128xf32>
    %c0_12 = arith.constant 0 : index
    %c0_13 = arith.constant 0 : index
    %c0_14 = arith.constant 0 : index
    %16 = vector.load %arg2[%c0_12, %c0_13, %c0_14] : memref<8x16x128xbf16, #tpu.memory_space<vmem>>, vector<1x16x128xbf16>
    %17 = vector.shape_cast %16 : vector<1x16x128xbf16> to vector<16x128xbf16>
    %18 = arith.extf %17 : vector<16x128xbf16> to vector<16x128xf32>
    %19 = arith.mulf %15, %18 : vector<16x128xf32>
    %20 = vector.extract_strided_slice %14 {offsets = [16, 0], sizes = [16, 128], strides = [1, 1]} : vector<128x128xf32> to vector<16x128xf32>
    %c1 = arith.constant 1 : index
    %c0_15 = arith.constant 0 : index
    %c0_16 = arith.constant 0 : index
    %21 = vector.load %arg2[%c1, %c0_15, %c0_16] : memref<8x16x128xbf16, #tpu.memory_space<vmem>>, vector<1x16x128xbf16>
    %22 = vector.shape_cast %21 : vector<1x16x128xbf16> to vector<16x128xbf16>
    %23 = arith.extf %22 : vector<16x128xbf16> to vector<16x128xf32>
    %24 = arith.mulf %20, %23 : vector<16x128xf32>
    %25 = arith.addf %19, %24 : vector<16x128xf32>
    %26 = vector.extract_strided_slice %14 {offsets = [32, 0], sizes = [16, 128], strides = [1, 1]} : vector<128x128xf32> to vector<16x128xf32>
    %c2 = arith.constant 2 : index
    %c0_17 = arith.constant 0 : index
    %c0_18 = arith.constant 0 : index
    %27 = vector.load %arg2[%c2, %c0_17, %c0_18] : memref<8x16x128xbf16, #tpu.memory_space<vmem>>, vector<1x16x128xbf16>
    %28 = vector.shape_cast %27 : vector<1x16x128xbf16> to vector<16x128xbf16>
    %29 = arith.extf %28 : vector<16x128xbf16> to vector<16x128xf32>
    %30 = arith.mulf %26, %29 : vector<16x128xf32>
    %31 = arith.addf %25, %30 : vector<16x128xf32>
    %32 = vector.extract_strided_slice %14 {offsets = [48, 0], sizes = [16, 128], strides = [1, 1]} : vector<128x128xf32> to vector<16x128xf32>
    %c3 = arith.constant 3 : index
    %c0_19 = arith.constant 0 : index
    %c0_20 = arith.constant 0 : index
    %33 = vector.load %arg2[%c3, %c0_19, %c0_20] : memref<8x16x128xbf16, #tpu.memory_space<vmem>>, vector<1x16x128xbf16>
    %34 = vector.shape_cast %33 : vector<1x16x128xbf16> to vector<16x128xbf16>
    %35 = arith.extf %34 : vector<16x128xbf16> to vector<16x128xf32>
    %36 = arith.mulf %32, %35 : vector<16x128xf32>
    %37 = arith.addf %31, %36 : vector<16x128xf32>
    %38 = vector.extract_strided_slice %14 {offsets = [64, 0], sizes = [16, 128], strides = [1, 1]} : vector<128x128xf32> to vector<16x128xf32>
    %c4 = arith.constant 4 : index
    %c0_21 = arith.constant 0 : index
    %c0_22 = arith.constant 0 : index
    %39 = vector.load %arg2[%c4, %c0_21, %c0_22] : memref<8x16x128xbf16, #tpu.memory_space<vmem>>, vector<1x16x128xbf16>
    %40 = vector.shape_cast %39 : vector<1x16x128xbf16> to vector<16x128xbf16>
    %41 = arith.extf %40 : vector<16x128xbf16> to vector<16x128xf32>
    %42 = arith.mulf %38, %41 : vector<16x128xf32>
    %43 = arith.addf %37, %42 : vector<16x128xf32>
    %44 = vector.extract_strided_slice %14 {offsets = [80, 0], sizes = [16, 128], strides = [1, 1]} : vector<128x128xf32> to vector<16x128xf32>
    %c5 = arith.constant 5 : index
    %c0_23 = arith.constant 0 : index
    %c0_24 = arith.constant 0 : index
    %45 = vector.load %arg2[%c5, %c0_23, %c0_24] : memref<8x16x128xbf16, #tpu.memory_space<vmem>>, vector<1x16x128xbf16>
    %46 = vector.shape_cast %45 : vector<1x16x128xbf16> to vector<16x128xbf16>
    %47 = arith.extf %46 : vector<16x128xbf16> to vector<16x128xf32>
    %48 = arith.mulf %44, %47 : vector<16x128xf32>
    %49 = arith.addf %43, %48 : vector<16x128xf32>
    %50 = vector.extract_strided_slice %14 {offsets = [96, 0], sizes = [16, 128], strides = [1, 1]} : vector<128x128xf32> to vector<16x128xf32>
    %c6 = arith.constant 6 : index
    %c0_25 = arith.constant 0 : index
    %c0_26 = arith.constant 0 : index
    %51 = vector.load %arg2[%c6, %c0_25, %c0_26] : memref<8x16x128xbf16, #tpu.memory_space<vmem>>, vector<1x16x128xbf16>
    %52 = vector.shape_cast %51 : vector<1x16x128xbf16> to vector<16x128xbf16>
    %53 = arith.extf %52 : vector<16x128xbf16> to vector<16x128xf32>
    %54 = arith.mulf %50, %53 : vector<16x128xf32>
    %55 = arith.addf %49, %54 : vector<16x128xf32>
    %56 = vector.extract_strided_slice %14 {offsets = [112, 0], sizes = [16, 128], strides = [1, 1]} : vector<128x128xf32> to vector<16x128xf32>
    %c7 = arith.constant 7 : index
    %c0_27 = arith.constant 0 : index
    %c0_28 = arith.constant 0 : index
    %57 = vector.load %arg2[%c7, %c0_27, %c0_28] : memref<8x16x128xbf16, #tpu.memory_space<vmem>>, vector<1x16x128xbf16>
    %58 = vector.shape_cast %57 : vector<1x16x128xbf16> to vector<16x128xbf16>
    %59 = arith.extf %58 : vector<16x128xbf16> to vector<16x128xf32>
    %60 = arith.mulf %56, %59 : vector<16x128xf32>
    %61 = arith.addf %55, %60 : vector<16x128xf32>
    %c0_29 = arith.constant 0 : index
    %c0_30 = arith.constant 0 : index
    %62 = vector.load %arg7[%c0_29, %c0_30] : memref<16x128xf32, #tpu.memory_space<vmem>>, vector<16x128xf32>
    tpu.vector_store %arg7[%c0_29, %c0_30], %61 {strides = array<i32>} : memref<16x128xf32, #tpu.memory_space<vmem>>, vector<16x128xf32>,
    return
  }
  func.func @transform_0(%arg0: i32) -> (i32, i32, i32) {
    %c0_i32 = arith.constant 0 : i32
    %c0_i32_0 = arith.constant 0 : i32
    %c0_i32_1 = arith.constant 0 : i32
    return %c0_i32, %arg0, %c0_i32_0 : i32, i32, i32
  }
  func.func @transform_1(%arg0: i32) -> (i32, i32, i32) {
    %c0_i32 = arith.constant 0 : i32
    %c0_i32_0 = arith.constant 0 : i32
    %c0_i32_1 = arith.constant 0 : i32
    return %c0_i32, %arg0, %c0_i32_0 : i32, i32, i32
  }
  func.func @transform_2(%arg0: i32) -> (i32, i32) {
    %c0_i32 = arith.constant 0 : i32
    %c0_i32_0 = arith.constant 0 : i32
    %c0_i32_1 = arith.constant 0 : i32
    return %c0_i32, %c0_i32_0 : i32, i32
  }
  func.func @transform_3(%arg0: i32) -> (i32, i32) {
    %c0_i32 = arith.constant 0 : i32
    %c0_i32_0 = arith.constant 0 : i32
    %c0_i32_1 = arith.constant 0 : i32
    return %c0_i32, %c0_i32_0 : i32, i32
  }
  func.func @transform_4(%arg0: i32) -> (i32, i32) {
    %c0_i32 = arith.constant 0 : i32
    %c0_i32_0 = arith.constant 0 : i32
    %c0_i32_1 = arith.constant 0 : i32
    return %c0_i32, %c0_i32_0 : i32, i32
  }
  func.func @transform_5(%arg0: i32) -> (i32, i32) {
    %c0_i32 = arith.constant 0 : i32
    %c0_i32_0 = arith.constant 0 : i32
    %c0_i32_1 = arith.constant 0 : i32
    return %c0_i32, %c0_i32_0 : i32, i32
  }
  func.func @transform_6(%arg0: i32) -> (i32, i32) {
    %c0_i32 = arith.constant 0 : i32
    %c0_i32_0 = arith.constant 0 : i32
    return %arg0, %c0_i32 : i32, i32
  }
}

</mosaic_0001>

<bundles_post_ra>
// kernel: tile.23
= control target key start
LH: loop header
LB: loop body
LE: loop exit
PB: predicated region body
PF: predicated region fallthrough
CT: control target
= control target key end

     0   :  { %s22_s0 = inlined_call_operand.vmem [shape: f32[32], index: 0, kind: input, shape index: {}]   ;;  %s23_s1 = inlined_call_operand.vmem [shape: f32[4,32], index: 1, kind: output, shape index: {}]  }
   0x1   :  { %v4_v0 = vld [vmem:[%s22_s0] ss:$0 sm:$0xff] }
   0x2   :  { %5 = vst [vmem:[%s23_s1] sm:$0xf] %v4_v0 }

// kernel: tile.24
= control target key start
LH: loop header
LB: loop body
LE: loop exit
PB: predicated region body
PF: predicated region fallthrough
CT: control target
= control target key end

     0   :  { %vm7_vm0 = vcmask 261120   ;;  %s37_s8 = smov 32   ;;  %s38_s9 = smov 64   ;;  %vm13_vm1 = vcmask 1048320   ;;  %vm19_vm2 = vcmask 785920   ;;  %vm25_vm3 = vcmask 523520   ;;  %s55_s0 = inlined_call_operand.vmem [shape: f32[4,32], index: 0, kind: input, shape index: {}]   ;;  %s56_s1 = inlined_call_operand.vmem [shape: f32[1,128], index: 1, kind: output, shape index: {}]  }
   0x1   :  { %v4_v0 = vld [vmem:[%s55_s0] sm:$0xf]  ;;  %s36_s0 = smov 96  }
   0x2   :  { %5 = vst [vmem:[#allocation1] sm:$0xf] %v4_v0 }
   0x9   :  { %v10_v1 = vld [vmem:[#allocation1 + $0x3] sm:$0x1]   ;;  %v22_v2 = vld [vmem:[#allocation1 + $0x1] sm:$0x1]   ;;  %v6_v3 = vld [vmem:[#allocation1] sm:$0x1]  }
   0xa   :  { %11 = vrot.lane.b32.xlu0 %v10_v1, %s36_s0  ;;  %23 = vrot.lane.b32.xlu1 %v22_v2, %s37_s8  ;;  %v16_v4 = vld [vmem:[#allocation1 + $0x2] sm:$0x1]   ;;  %8 = vst.msk [vmem:[#allocation0] sm:$0x1] %vm7_vm0, %v6_v3  }
   0xe   :  { %17 = vrot.lane.b32.xlu0 %v16_v4, %s38_s9 }
  0x7c   :  { %v12_v5 = vpop.permute.xlu0 %11   ;;  %v24_v6 = vpop.permute.xlu1 %23  }
  0x7d   :  { %14 = vst.msk [vmem:[#allocation0] sm:$0x1] %vm13_vm1, %v12_v5  }
  0x80   :  { %v18_v7 = vpop.permute.xlu0 %17  }
  0x81   :  { %20 = vst.msk [vmem:[#allocation0] sm:$0x1] %vm19_vm2, %v18_v7  }
  0x82   :  { %26 = vst.msk [vmem:[#allocation0] sm:$0x1] %vm25_vm3, %v24_v6  }
  0x89   :  { %v30_v8 = vld [vmem:[#allocation0] sm:$0x1] }
  0x8a   :  { %32 = vst [vmem:[%s56_s1] sm:$0x1] %v30_v8 }

// kernel: three_d_branch.3
= control target key start
LH: loop header
LB: loop body
LE: loop exit
PB: predicated region body
PF: predicated region fallthrough
CT: control target
= control target key end

     0   :  { %s1310_s21 = smov 0   ;;  %s1312_s22 = smov 0   ;;  %s1458_s0 = inlined_call_operand.vmem [shape: bf16[8,32,12], index: 0, kind: input, shape index: {}]   ;;  %s1459_s1 = inlined_call_operand.vmem [shape: bf16[8,32,128], index: 1, kind: input, shape index: {}]   ;;  %s1460_s2 = inlined_call_operand.vmem [shape: bf16[12,128], index: 2, kind: input, shape index: {}]   ;;  %s1461_s3 = inlined_call_operand.vmem [shape: f32[1,128], index: 3, kind: input, shape index: {}]   ;;  %s1462_s4 = inlined_call_operand.vmem [shape: bf16[128,128], index: 4, kind: input, shape index: {}]   ;;  %s1463_s5 = inlined_call_operand.vmem [shape: f32[1,128], index: 5, kind: input, shape index: {}]   ;;  %s1464_s6 = inlined_call_operand.vmem [shape: f32[32,128], index: 6, kind: output, shape index: {}]  }
   0x1   :  { %s1314_s23 = smov 0  }
   0x2 LB: > { %s1019_s24 = sadd.s32 4294967295, %s1273_s23   ;;  %s1327_s25 = sadd.s32 1, %s1273_s23   ;;  %s1273_s23 = sphi %s1314_s23, %s1468_s23   ;;  %s1269_s22 = sphi %s1312_s22, %s1467_s22   ;;  %s1265_s21 = sphi %s1310_s21, %s1466_s21  }
   0x3   : > { %s20_s26 = ssub.s32 %s1273_s23, %s1327_s25  ;;  %s23_s27 = sadd.s32 1, %s1269_s22 }
   0x4   : > { %p21_p0 = scmp.eq.s32.totalorder %s20_s26, 0  ;;  %p30_p1 = scmp.ne.s32.totalorder %s1269_s22, %s1265_s21 }
   0x5   : > { %p31_p2 = scmp.eq.s32.totalorder %s1273_s23, 0  ;;  %p1022_p4 = scmp.ge.s32.totalorder %s1273_s23, 2 }
   0x6   : > { %s1336_s28 = scalar_select %p21_p0, %s1269_s22, %s23_s27  }
   0x7   : > { %p1338_p3 = por %p31_p2, %p30_p1  ;;  %204 = sbr.rel (%p1022_p4) target bundleno = 30 (0x1e), region = 32 }
   0xe   : > { %207 = sbr.rel (!%p1338_p3) target bundleno = 22 (0x16), region = 36  ;;  %s209_s30 = sand.u32 (%p1338_p3), 1, %s1269_s22  }
   0xf   : > { %s1077_s7 = sshll.u32 (%p1338_p3), %s1273_s23, 3  ;;  %s1023_s8 = sshll.u32 (%p1338_p3), %s209_s30, 6 }
  0x10   : > { %s214_s11 = scalar_lea.vmem (%p1338_p3), %s1458_s0, %s1077_s7  ;;  %s211_s12 = scalar_lea.vmem (%p1338_p3), [#allocation2], %s1023_s8 }
  0x11   : > { %v230_v0 = vld [vmem:[%s214_s11] sm:$0xff] (%p1338_p3)   ;;  %v234_v1 = vld [vmem:[%s214_s11 + $0x10] sm:$0xff] (%p1338_p3)  }
  0x12   : > { %v238_v2 = vld [vmem:[%s214_s11 + $0x20] sm:$0xff] (%p1338_p3)   ;;  %231 = vst [vmem:[%s211_s12] sm:$0xff] (%p1338_p3), %v230_v0   ;;  %235 = vst [vmem:[%s211_s12 + $0x8] sm:$0xff] (%p1338_p3), %v234_v1   ;;  %v242_v3 = vld [vmem:[%s214_s11 + $0x30] sm:$0xff] (%p1338_p3)  }
  0x13   : > { %239 = vst [vmem:[%s211_s12 + $0x10] sm:$0xff] (%p1338_p3), %v238_v2   ;;  %v246_v4 = vld [vmem:[%s214_s11 + $0x40] sm:$0xff] (%p1338_p3)   ;;  %v250_v5 = vld [vmem:[%s214_s11 + $0x50] sm:$0xff] (%p1338_p3)   ;;  %243 = vst [vmem:[%s211_s12 + $0x18] sm:$0xff] (%p1338_p3), %v242_v3  }
  0x14   : > { %247 = vst [vmem:[%s211_s12 + $0x20] sm:$0xff] (%p1338_p3), %v246_v4   ;;  %251 = vst [vmem:[%s211_s12 + $0x28] sm:$0xff] (%p1338_p3), %v250_v5   ;;  %v254_v6 = vld [vmem:[%s214_s11 + $0x60] sm:$0xff] (%p1338_p3)   ;;  %v258_v7 = vld [vmem:[%s214_s11 + $0x70] sm:$0xff] (%p1338_p3)  }
  0x15   : > { %255 = vst [vmem:[%s211_s12 + $0x30] sm:$0xff] %v254_v6   ;;  %259 = vst [vmem:[%s211_s12 + $0x38] sm:$0xff] %v258_v7  }
  0x16 PF: > { %316 = sbr.rel (!%p1338_p3) target bundleno = 30 (0x1e), region = 77  ;;  %s318_s13 = sand.u32 (%p1338_p3), 1, %s1269_s22  }
  0x17   : > { %s1078_s14 = sshll.u32 (%p1338_p3), %s1273_s23, 3  ;;  %s1026_s15 = sshll.u32 (%p1338_p3), %s318_s13, 6 }
  0x18   : > { %s323_s18 = scalar_lea.vmem (%p1338_p3), %s1459_s1, %s1078_s14  ;;  %s320_s19 = scalar_lea.vmem (%p1338_p3), [#allocation3], %s1026_s15 }
  0x19   : > { %v339_v8 = vld [vmem:[%s323_s18] sm:$0xff] (%p1338_p3)   ;;  %v343_v9 = vld [vmem:[%s323_s18 + $0x10] sm:$0xff] (%p1338_p3)  }
  0x1a   : > { %v347_v10 = vld [vmem:[%s323_s18 + $0x20] sm:$0xff] (%p1338_p3)   ;;  %340 = vst [vmem:[%s320_s19] sm:$0xff] (%p1338_p3), %v339_v8   ;;  %344 = vst [vmem:[%s320_s19 + $0x8] sm:$0xff] (%p1338_p3), %v343_v9   ;;  %v351_v11 = vld [vmem:[%s323_s18 + $0x30] sm:$0xff] (%p1338_p3)  }
  0x1b   : > { %348 = vst [vmem:[%s320_s19 + $0x10] sm:$0xff] (%p1338_p3), %v347_v10   ;;  %v355_v12 = vld [vmem:[%s323_s18 + $0x40] sm:$0xff] (%p1338_p3)   ;;  %v359_v13 = vld [vmem:[%s323_s18 + $0x50] sm:$0xff] (%p1338_p3)   ;;  %352 = vst [vmem:[%s320_s19 + $0x18] sm:$0xff] (%p1338_p3), %v351_v11  }
  0x1c   : > { %356 = vst [vmem:[%s320_s19 + $0x20] sm:$0xff] (%p1338_p3), %v355_v12   ;;  %360 = vst [vmem:[%s320_s19 + $0x28] sm:$0xff] (%p1338_p3), %v359_v13   ;;  %v363_v14 = vld [vmem:[%s323_s18 + $0x60] sm:$0xff] (%p1338_p3)   ;;  %v367_v15 = vld [vmem:[%s323_s18 + $0x70] sm:$0xff] (%p1338_p3)  }
  0x1d   : > { %364 = vst [vmem:[%s320_s19 + $0x30] sm:$0xff] %v363_v14   ;;  %368 = vst [vmem:[%s320_s19 + $0x38] sm:$0xff] %v367_v15  }
  0x1e PF: > { %p1029_p5 = scmp.ge.s32.totalorder %s1273_s23, 1  ;;  %p424_p6 = scmp.lt.s32.totalorder %s1273_s23, 3 }
  0x20   : > { %p425_p7 = pnand %p1029_p5, %p424_p6 }
  0x21   : > { %v1234_v16 = vld [vmem:[%s1460_s2] sm:$0x3f] (!%p425_p7)   ;;  %vm575_vm0 = vcmask (!%p425_p7), 1045504   ;;  %s431_s27 = sand.u32 (!%p425_p7), 1, %s1265_s21   ;;  %vm550_vm1 = vcmask (!%p425_p7), 97280   ;;  %v1244_v19 = vld [vmem:[%s1462_s4 + $0x8] sm:$0xff] (!%p425_p7)  }
  0x22   : > { %428 = sbr.rel (%p425_p7) target bundleno = 508 (0x1fc), region = 118  ;;  %v1243_v17 = vld [vmem:[%s1462_s4] sm:$0xff] (!%p425_p7)   ;;  %1209 = vmatprep.subr.msk.bf16.mxu0 (!%p425_p7), %vm575_vm0, %v1234_v16  ;;  %v577_v18 = vsel (!%p425_p7), %vm575_vm0, %v1234_v16, 0  ;;  %s1366_s7 = sshll.u32 (!%p425_p7), %s431_s27, 6  ;;  %v1245_v25 = vld [vmem:[%s1462_s4 + $0x10] sm:$0xff] (!%p425_p7)   ;;  %v1246_v26 = vld [vmem:[%s1462_s4 + $0x18] sm:$0xff] (!%p425_p7)  }
  0x23   : > { %1144 = vmatpush3.bf16.msra.mxu0 (!%p425_p7), %v577_v18  ;;  %1193 = vmatprep.subr.bf16.mxu1 (!%p425_p7), %v1243_v17  ;;  %s1372_s10 = scalar_lea.vmem (!%p425_p7), [#allocation2], %s1366_s7  ;;  %v1247_v27 = vld [vmem:[%s1462_s4 + $0x20] sm:$0xff] (!%p425_p7)   ;;  %v1248_v30 = vld [vmem:[%s1462_s4 + $0x28] sm:$0xff] (!%p425_p7)   ;;  %v1249_v32 = vld [vmem:[%s1462_s4 + $0x30] sm:$0xff] (!%p425_p7)   ;;  %s1412_s30 = scalar_lea.vmem (!%p425_p7), [#allocation3], %s1366_s7 }
  0x24   : > { %v1235_v20 = vld [vmem:[%s1372_s10] sm:$0xff] (!%p425_p7)   ;;  %1161 = vmatprep.subr.bf16.mxu0 (!%p425_p7), %v1243_v17  ;;  %1201 = vmatpush3.bf16.msra.mxu1 (!%p425_p7), %v1243_v17  ;;  %v1236_v21 = vld [vmem:[%s1372_s10 + $0x8] sm:$0xff] (!%p425_p7)   ;;  %v1237_v22 = vld [vmem:[%s1372_s10 + $0x10] sm:$0xff] (!%p425_p7)   ;;  %s1032_s7 = sshll.u32 (!%p425_p7), %s1019_s24, 1 }
  0x25   : > { %1194 = vmatprep.subr.bf16.mxu1 (!%p425_p7), %v1244_v19  ;;  %1145 = vmatprep.mubr.msk.bf16.mxu0 (!%p425_p7), %vm550_vm1, %v1235_v20  ;;  %v1238_v23 = vld [vmem:[%s1372_s10 + $0x18] sm:$0xff] (!%p425_p7)   ;;  %v1239_v24 = vld [vmem:[%s1372_s10 + $0x20] sm:$0xff] (!%p425_p7)   ;;  %v1240_v28 = vld [vmem:[%s1372_s10 + $0x28] sm:$0xff] (!%p425_p7)   ;;  %p474_p8 = scmp.lt.s32.totalorder (!%p425_p7), %s1032_s7, 3 }
  0x26   : > { %1146 = vmatmul.mubr.msk.bf16.vlgmr.msra.gmra.mrb[0].mxu0 (!%p425_p7), %vm550_vm1, %v1236_v21  ;;  %v1241_v29 = vld [vmem:[%s1372_s10 + $0x30] sm:$0xff] (!%p425_p7)   ;;  %v1242_v31 = vld [vmem:[%s1372_s10 + $0x38] sm:$0xff] (!%p425_p7)   ;;  %v1034_v34 = vld [vmem:[%s1461_s3] ss:$0 sm:$0xff] (!%p425_p7) }
  0x27   : > { %1149 = vmatprep.mubr.msk.bf16.mxu0 (!%p425_p7), %vm550_vm1, %v1237_v22  ;;  %1162 = vmatpush3.bf16.msra.mxu0 (!%p425_p7), %v1243_v17  ;;  %v1250_v33 = vld [vmem:[%s1462_s4 + $0x38] sm:$0xff] (!%p425_p7)  }
  0x28   : > { %1163 = vmatprep.subr.bf16.mxu0 (!%p425_p7), %v1244_v19  ;;  %1202 = vmatpush3.bf16.msra.mxu1 (!%p425_p7), %v1244_v19 }
  0x29   : > { %1195 = vmatprep.subr.bf16.mxu1 %v1245_v25  ;;  %s1470_s7 = smov (!%p474_p8, %s1032_s7), 3 }
  0x2a   : > { %s1033_s23 = sshll.u32 %s1470_s7, 3 }
  0x2b   : > { %1164 = vmatpush3.bf16.msra.mxu0 %v1244_v19  ;;  %s477_s21 = scalar_lea.vmem %s1464_s6, %s1033_s23 }
  0x2c   : > { %1165 = vmatprep.subr.bf16.mxu0 %v1245_v25  ;;  %1203 = vmatpush3.bf16.msra.mxu1 %v1245_v25 }
  0x2d   : > { %1196 = vmatprep.subr.bf16.mxu1 %v1246_v26 }
  0x2e   : > { %1150 = vmatmul.mubr.msk.bf16.gmra.mrb[4].mxu0 %vm550_vm1, %v1238_v23 }
  0x2f   : > { %1153 = vmatprep.mubr.msk.bf16.mxu0 %vm550_vm1, %v1239_v24  ;;  %1166 = vmatpush3.bf16.msra.mxu0 %v1245_v25 }
  0x30   : > { %1167 = vmatprep.subr.bf16.mxu0 %v1246_v26  ;;  %1204 = vmatpush3.bf16.msra.mxu1 %v1246_v26 }
  0x31   : > { %1197 = vmatprep.subr.bf16.mxu1 %v1247_v27 }
  0x33   : > { %1168 = vmatpush3.bf16.msra.mxu0 %v1246_v26 }
  0x34   : > { %1169 = vmatprep.subr.bf16.mxu0 %v1247_v27  ;;  %1205 = vmatpush3.bf16.msra.mxu1 %v1247_v27 }
  0x35   : > { %1198 = vmatprep.subr.bf16.mxu1 %v1248_v30 }
  0x36   : > { %1154 = vmatmul.mubr.msk.bf16.gmra.mrb[8].mxu0 %vm550_vm1, %v1240_v28  ;;  %v1080_v28 = vld [vmem:[%s1412_s30] sm:$0xff]  }
  0x37   : > { %1157 = vmatprep.mubr.msk.bf16.mxu0 %vm550_vm1, %v1241_v29  ;;  %1170 = vmatpush3.bf16.msra.mxu0 %v1247_v27  ;;  %v1111_v27 = vld [vmem:[%s1412_s30 + $0x8] sm:$0xff]   ;;  %v1419_v29 = vld [vmem:[%s1463_s5] ss:$0 sm:$0xff] }
  0x38   : > { %1171 = vmatprep.subr.bf16.mxu0 %v1248_v30  ;;  %1206 = vmatpush3.bf16.msra.mxu1 %v1248_v30 }
  0x39   : > { %1199 = vmatprep.subr.bf16.mxu1 %v1249_v32 }
  0x3b   : > { %1172 = vmatpush3.bf16.msra.mxu0 %v1248_v30  ;;  %v1085_v30 = vunpack.c.l.bf16 %v1111_v27 }
  0x3c   : > { %1173 = vmatprep.subr.bf16.mxu0 %v1249_v32  ;;  %1207 = vmatpush3.bf16.msra.mxu1 %v1249_v32 }
  0x3d   : > { %1200 = vmatprep.subr.bf16.mxu1 %v1250_v33 }
  0x3e   : > { %1158 = vmatmul.mubr.msk.bf16.gmra.mrb[12].mxu0 %vm550_vm1, %v1242_v31 }
  0x3f   : > { %1174 = vmatpush3.bf16.msra.mxu0 %v1249_v32  ;;  %v1081_v32 = vunpack.c.l.bf16 %v1080_v28 }
  0x40   : > { %1175 = vmatprep.subr.bf16.mxu0 %v1250_v33  ;;  %1208 = vmatpush3.bf16.msra.mxu1 %v1250_v33 }
  0x43   : > { %1176 = vmatpush3.bf16.msra.mxu0 %v1250_v33 }
  0xf9   : > { %v1147_v35 = vpop.f32.mrb[0].mxu0 }
  0xfa   : > { %v622_v36 = vadd.f32 %v1147_v35, %v1034_v34  ;;  %v613_v37 = vpop.f32.mrb[1].mxu0  ;;  %v1086_v35 = vunpack.c.h.bf16 %v1111_v27 }
  0xfb   : > { %v614_v38 = vadd.f32 %v1034_v34, %v613_v37  ;;  %v1148_v39 = vpop.f32.mrb[2].mxu0 }
  0xfc   : > { %v625_v40 = vadd.f32 %v1148_v39, %v1034_v34  ;;  %v616_v41 = vpop.f32.mrb[3].mxu0  ;;  %v678_v43 = vmax.f32 %v622_v36, 0.0 }
  0xfd   : > { %v617_v42 = vadd.f32 %v1034_v34, %v616_v41  ;;  %v676_v45 = vmax.f32 %v614_v38, 0.0  ;;  %v1082_v38 = vunpack.c.h.bf16 %v1080_v28 }
  0xfe   : > { %v679_v44 = vmax.f32 %v625_v40, 0.0 }
  0xff   : > { %v677_v46 = vmax.f32 %v617_v42, 0.0 }
 0x100   : > { %v693_v47 = vpack.c.bf16 %v679_v44, %v678_v43 }
 0x101   : > { %v692_v48 = vpack.c.bf16 %v677_v46, %v676_v45  ;;  %v1151_v49 = vpop.f32.mrb[4].mxu0  ;;  %v1112_v45 = vld [vmem:[%s1412_s30 + $0x10] sm:$0xff]  }
 0x102   : > { %v638_v50 = vadd.f32 %v1151_v49, %v1034_v34  ;;  %v629_v51 = vpop.f32.mrb[5].mxu0 }
 0x103   : > { %v630_v52 = vadd.f32 %v1034_v34, %v629_v51  ;;  %v1152_v53 = vpop.f32.mrb[6].mxu0  ;;  %1177 = vmatprep.mubr.bf16.mxu0 %v692_v48  ;;  %v1113_v48 = vld [vmem:[%s1412_s30 + $0x18] sm:$0xff]   ;;  %v1089_v51 = vunpack.c.l.bf16 %v1112_v45 }
 0x104   : > { %v641_v54 = vadd.f32 %v1152_v53, %v1034_v34  ;;  %v632_v55 = vpop.f32.mrb[7].mxu0  ;;  %1178 = vmatmul.mubr.bf16.vlgmr.msra.gmra.mrb[16].mxu0 %v693_v47  ;;  %v682_v57 = vmax.f32 %v638_v50, 0.0 }
 0x105   : > { %v633_v56 = vadd.f32 %v1034_v34, %v632_v55  ;;  %v680_v59 = vmax.f32 %v630_v52, 0.0 }
 0x106   : > { %v683_v58 = vmax.f32 %v641_v54, 0.0  ;;  %v1093_v54 = vunpack.c.l.bf16 %v1113_v48 }
 0x107   : > { %v681_v60 = vmax.f32 %v633_v56, 0.0 }
 0x108   : > { %v695_v61 = vpack.c.bf16 %v683_v58, %v682_v57  ;;  %v1090_v57 = vunpack.c.h.bf16 %v1112_v45 }
 0x109   : > { %v1155_v62 = vpop.f32.mrb[8].mxu0  ;;  %v694_v63 = vpack.c.bf16 %v681_v60, %v680_v59 }
 0x10a   : > { %v654_v0 = vadd.f32 %v1155_v62, %v1034_v34  ;;  %v645_v1 = vpop.f32.mrb[9].mxu0 }
 0x10b   : > { %v646_v2 = vadd.f32 %v1034_v34, %v645_v1  ;;  %v1156_v3 = vpop.f32.mrb[10].mxu0  ;;  %1181 = vmatprep.mubr.bf16.mxu1 %v694_v63  ;;  %v1114_v63 = vld [vmem:[%s1412_s30 + $0x20] sm:$0xff]  }
 0x10c   : > { %v657_v4 = vadd.f32 %v1156_v3, %v1034_v34  ;;  %v648_v5 = vpop.f32.mrb[11].mxu0  ;;  %1182 = vmatmul.mubr.bf16.vlgmr.msra.gmra.mrb[0].mxu1 %v695_v61  ;;  %v686_v7 = vmax.f32 %v654_v0, 0.0  ;;  %v1094_v61 = vunpack.c.h.bf16 %v1113_v48  ;;  %v1115_v3 = vld [vmem:[%s1412_s30 + $0x28] sm:$0xff]  }
 0x10d   : > { %v649_v6 = vadd.f32 %v1034_v34, %v648_v5  ;;  %v684_v9 = vmax.f32 %v646_v2, 0.0 }
 0x10e   : > { %v687_v8 = vmax.f32 %v657_v4, 0.0 }
 0x10f   : > { %v685_v10 = vmax.f32 %v649_v6, 0.0 }
 0x110   : > { %v697_v11 = vpack.c.bf16 %v687_v8, %v686_v7  ;;  %v1097_v8 = vunpack.c.l.bf16 %v1114_v63 }
 0x111   : > { %v696_v12 = vpack.c.bf16 %v685_v10, %v684_v9  ;;  %v1159_v13 = vpop.f32.mrb[12].mxu0  ;;  %v1101_v9 = vunpack.c.l.bf16 %v1115_v3 }
 0x112   : > { %v670_v14 = vadd.f32 %v1159_v13, %v1034_v34  ;;  %v661_v15 = vpop.f32.mrb[13].mxu0 }
 0x113   : > { %v662_v16 = vadd.f32 %v1034_v34, %v661_v15  ;;  %v1160_v17 = vpop.f32.mrb[14].mxu0  ;;  %1185 = vmatprep.mubr.bf16.mxu1 %v696_v12  ;;  %v1098_v15 = vunpack.c.h.bf16 %v1114_v63 }
 0x114   : > { %v673_v18 = vadd.f32 %v1160_v17, %v1034_v34  ;;  %v664_v19 = vpop.f32.mrb[15].mxu0  ;;  %1186 = vmatmul.mubr.bf16.gmra.mrb[4].mxu1 %v697_v11  ;;  %v690_v21 = vmax.f32 %v670_v14, 0.0 }
 0x115   : > { %v665_v20 = vadd.f32 %v1034_v34, %v664_v19  ;;  %v688_v23 = vmax.f32 %v662_v16, 0.0  ;;  %v1102_v19 = vunpack.c.h.bf16 %v1115_v3 }
 0x116   : > { %v691_v22 = vmax.f32 %v673_v18, 0.0 }
 0x117   : > { %v689_v24 = vmax.f32 %v665_v20, 0.0 }
 0x118   : > { %v699_v25 = vpack.c.bf16 %v691_v22, %v690_v21  ;;  %v1116_v21 = vld [vmem:[%s1412_s30 + $0x30] sm:$0xff]  }
 0x119   : > { %v698_v26 = vpack.c.bf16 %v689_v24, %v688_v23 }
 0x11b   : > { %1189 = vmatprep.mubr.bf16.mxu1 %v698_v26 }
 0x11c   : > { %1190 = vmatmul.mubr.bf16.gmra.mrb[8].mxu1 %v699_v25  ;;  %v1117_v25 = vld [vmem:[%s1412_s30 + $0x38] sm:$0xff]  }
 0x1d7   : > { %v1179_v31 = vpop.f32.mrb[16].mxu0 }
 0x1d8   : > { %v814_v33 = vadd.f32 %v1179_v31, %v1419_v29  ;;  %v805_v34 = vpop.f32.mrb[17].mxu0  ;;  %v1105_v31 = vunpack.c.l.bf16 %v1116_v21 }
 0x1d9   : > { %v806_v36 = vadd.f32 %v1419_v29, %v805_v34  ;;  %v1180_v37 = vpop.f32.mrb[18].mxu0 }
 0x1da   : > { %v879_v39 = vmul.f32 %v1085_v30, %v814_v33  ;;  %v817_v40 = vadd.f32 %v1180_v37, %v1419_v29  ;;  %v808_v41 = vpop.f32.mrb[19].mxu0 }
 0x1db   : > { %v872_v42 = vmul.f32 %v1081_v32, %v806_v36  ;;  %v809_v43 = vadd.f32 %v1419_v29, %v808_v41  ;;  %v1109_v32 = vunpack.c.l.bf16 %v1117_v25 }
 0x1dc   : > { %v880_v44 = vmul.f32 %v1086_v35, %v817_v40 }
 0x1dd   : > { %v881_v46 = vadd.f32 %v879_v39, %v872_v42  ;;  %v873_v47 = vmul.f32 %v1082_v38, %v809_v43  ;;  %v1106_v38 = vunpack.c.h.bf16 %v1116_v21  ;;  %v1110_v42 = vunpack.c.h.bf16 %v1117_v25 }
 0x1df   : > { %v882_v49 = vadd.f32 %v880_v44, %v873_v47  ;;  %v1183_v50 = vpop.f32.mrb[0].mxu1 }
 0x1e0   : > { %v821_v52 = vpop.f32.mrb[1].mxu1  ;;  %v830_v53 = vadd.f32 %v1183_v50, %v1419_v29 }
 0x1e1   : > { %v822_v55 = vadd.f32 %v1419_v29, %v821_v52  ;;  %v1184_v56 = vpop.f32.mrb[2].mxu1 }
 0x1e2   : > { %v824_v58 = vpop.f32.mrb[3].mxu1  ;;  %v833_v60 = vadd.f32 %v1184_v56, %v1419_v29  ;;  %v897_v0 = vmul.f32 %v1093_v54, %v830_v53 }
 0x1e3   : > { %v888_v59 = vmul.f32 %v1089_v51, %v822_v55  ;;  %v825_v62 = vadd.f32 %v1419_v29, %v824_v58 }
 0x1e4   : > { %v898_v4 = vmul.f32 %v1094_v61, %v833_v60 }
 0x1e5   : > { %v890_v1 = vadd.f32 %v888_v59, %v881_v46  ;;  %v889_v2 = vmul.f32 %v1090_v57, %v825_v62 }
 0x1e7   : > { %v891_v5 = vadd.f32 %v889_v2, %v882_v49  ;;  %v1187_v6 = vpop.f32.mrb[4].mxu1  ;;  %v899_v7 = vadd.f32 %v897_v0, %v890_v1 }
 0x1e8   : > { %v837_v10 = vpop.f32.mrb[5].mxu1  ;;  %v846_v11 = vadd.f32 %v1187_v6, %v1419_v29 }
 0x1e9   : > { %v838_v12 = vadd.f32 %v1419_v29, %v837_v10  ;;  %v1188_v13 = vpop.f32.mrb[6].mxu1  ;;  %v900_v14 = vadd.f32 %v898_v4, %v891_v5 }
 0x1ea   : > { %v840_v16 = vpop.f32.mrb[7].mxu1  ;;  %v849_v18 = vadd.f32 %v1188_v13, %v1419_v29  ;;  %v915_v22 = vmul.f32 %v1101_v9, %v846_v11 }
 0x1eb   : > { %v906_v17 = vmul.f32 %v1097_v8, %v838_v12  ;;  %v841_v20 = vadd.f32 %v1419_v29, %v840_v16 }
 0x1ec   : > { %v916_v26 = vmul.f32 %v1102_v19, %v849_v18 }
 0x1ed   : > { %v908_v23 = vadd.f32 %v906_v17, %v899_v7  ;;  %v907_v24 = vmul.f32 %v1098_v15, %v841_v20 }
 0x1ef   : > { %v909_v27 = vadd.f32 %v907_v24, %v900_v14  ;;  %v1191_v28 = vpop.f32.mrb[8].mxu1  ;;  %v917_v30 = vadd.f32 %v915_v22, %v908_v23 }
 0x1f0   : > { %v853_v33 = vpop.f32.mrb[9].mxu1  ;;  %v862_v34 = vadd.f32 %v1191_v28, %v1419_v29 }
 0x1f1   : > { %v854_v35 = vadd.f32 %v1419_v29, %v853_v33  ;;  %v1192_v36 = vpop.f32.mrb[10].mxu1  ;;  %v918_v37 = vadd.f32 %v916_v26, %v909_v27 }
 0x1f2   : > { %v856_v39 = vpop.f32.mrb[11].mxu1  ;;  %v865_v41 = vadd.f32 %v1192_v36, %v1419_v29  ;;  %v933_v44 = vmul.f32 %v1109_v32, %v862_v34 }
 0x1f3   : > { %v924_v40 = vmul.f32 %v1105_v31, %v854_v35  ;;  %v857_v43 = vadd.f32 %v1419_v29, %v856_v39 }
 0x1f4   : > { %v934_v48 = vmul.f32 %v1110_v42, %v865_v41 }
 0x1f5   : > { %v926_v45 = vadd.f32 %v924_v40, %v917_v30  ;;  %v925_v46 = vmul.f32 %v1106_v38, %v857_v43 }
 0x1f7   : > { %v935_v47 = vadd.f32 %v933_v44, %v926_v45  ;;  %v927_v49 = vadd.f32 %v925_v46, %v918_v37 }
 0x1f9   : > { %937 = vst [vmem:[%s477_s21] sm:$0xff] %v935_v47  ;;  %v936_v50 = vadd.f32 %v934_v48, %v927_v49 }
 0x1fb   : > { %938 = vst [vmem:[%s477_s21 + $0x8] sm:$0xff] %v936_v50 }
 0x1fc PF: > { %p13_p9 = scmp.ge.s32.totalorder %s1327_s25, 4   ;;  %s1466_s21 = smov %s1269_s22 }
 0x1fd   : > { %s1467_s22 = smov %s1336_s28  ;;  %s1468_s23 = smov %s1327_s25 }
 0x1fe   :  { %15 = sbr.rel (!%p13_p9) target bundleno = 2 (0x2), region = 176 }

// kernel: three_d_branch.2
= control target key start
LH: loop header
LB: loop body
LE: loop exit
PB: predicated region body
PF: predicated region fallthrough
CT: control target
= control target key end

     0   :  { %s1327_s21 = smov 0   ;;  %s1329_s22 = smov 0   ;;  %s1475_s0 = inlined_call_operand.vmem [shape: bf16[8,32,12], index: 0, kind: input, shape index: {}]   ;;  %s1476_s1 = inlined_call_operand.vmem [shape: bf16[8,32,128], index: 1, kind: input, shape index: {}]   ;;  %s1477_s2 = inlined_call_operand.vmem [shape: bf16[12,128], index: 2, kind: input, shape index: {}]   ;;  %s1478_s3 = inlined_call_operand.vmem [shape: f32[1,128], index: 3, kind: input, shape index: {}]   ;;  %s1479_s4 = inlined_call_operand.vmem [shape: bf16[128,128], index: 4, kind: input, shape index: {}]   ;;  %s1480_s5 = inlined_call_operand.vmem [shape: f32[1,128], index: 5, kind: input, shape index: {}]   ;;  %s1481_s6 = inlined_call_operand.vmem [shape: bf16[32,128], index: 6, kind: output, shape index: {}]  }
   0x1   :  { %s1331_s23 = smov 0  }
   0x2 LB: > { %s1027_s24 = sadd.s32 4294967295, %s1290_s23   ;;  %s1344_s25 = sadd.s32 1, %s1290_s23   ;;  %s1290_s23 = sphi %s1331_s23, %s1485_s23   ;;  %s1286_s22 = sphi %s1329_s22, %s1484_s22   ;;  %s1282_s21 = sphi %s1327_s21, %s1483_s21  }
   0x3   : > { %s20_s26 = ssub.s32 %s1290_s23, %s1344_s25  ;;  %s23_s27 = sadd.s32 1, %s1286_s22 }
   0x4   : > { %p21_p0 = scmp.eq.s32.totalorder %s20_s26, 0  ;;  %p30_p1 = scmp.ne.s32.totalorder %s1286_s22, %s1282_s21 }
   0x5   : > { %p31_p2 = scmp.eq.s32.totalorder %s1290_s23, 0  ;;  %p1030_p4 = scmp.ge.s32.totalorder %s1290_s23, 2 }
   0x6   : > { %s1353_s28 = scalar_select %p21_p0, %s1286_s22, %s23_s27  }
   0x7   : > { %p1355_p3 = por %p31_p2, %p30_p1  ;;  %204 = sbr.rel (%p1030_p4) target bundleno = 30 (0x1e), region = 32 }
   0xe   : > { %207 = sbr.rel (!%p1355_p3) target bundleno = 22 (0x16), region = 36  ;;  %s209_s30 = sand.u32 (%p1355_p3), 1, %s1286_s22  }
   0xf   : > { %s1087_s7 = sshll.u32 (%p1355_p3), %s1290_s23, 3  ;;  %s1031_s8 = sshll.u32 (%p1355_p3), %s209_s30, 6 }
  0x10   : > { %s214_s11 = scalar_lea.vmem (%p1355_p3), %s1475_s0, %s1087_s7  ;;  %s211_s12 = scalar_lea.vmem (%p1355_p3), [#allocation2], %s1031_s8 }
  0x11   : > { %v230_v0 = vld [vmem:[%s214_s11] sm:$0xff] (%p1355_p3)   ;;  %v234_v1 = vld [vmem:[%s214_s11 + $0x10] sm:$0xff] (%p1355_p3)  }
  0x12   : > { %v238_v2 = vld [vmem:[%s214_s11 + $0x20] sm:$0xff] (%p1355_p3)   ;;  %231 = vst [vmem:[%s211_s12] sm:$0xff] (%p1355_p3), %v230_v0   ;;  %235 = vst [vmem:[%s211_s12 + $0x8] sm:$0xff] (%p1355_p3), %v234_v1   ;;  %v242_v3 = vld [vmem:[%s214_s11 + $0x30] sm:$0xff] (%p1355_p3)  }
  0x13   : > { %239 = vst [vmem:[%s211_s12 + $0x10] sm:$0xff] (%p1355_p3), %v238_v2   ;;  %v246_v4 = vld [vmem:[%s214_s11 + $0x40] sm:$0xff] (%p1355_p3)   ;;  %v250_v5 = vld [vmem:[%s214_s11 + $0x50] sm:$0xff] (%p1355_p3)   ;;  %243 = vst [vmem:[%s211_s12 + $0x18] sm:$0xff] (%p1355_p3), %v242_v3  }
  0x14   : > { %247 = vst [vmem:[%s211_s12 + $0x20] sm:$0xff] (%p1355_p3), %v246_v4   ;;  %251 = vst [vmem:[%s211_s12 + $0x28] sm:$0xff] (%p1355_p3), %v250_v5   ;;  %v254_v6 = vld [vmem:[%s214_s11 + $0x60] sm:$0xff] (%p1355_p3)   ;;  %v258_v7 = vld [vmem:[%s214_s11 + $0x70] sm:$0xff] (%p1355_p3)  }
  0x15   : > { %255 = vst [vmem:[%s211_s12 + $0x30] sm:$0xff] %v254_v6   ;;  %259 = vst [vmem:[%s211_s12 + $0x38] sm:$0xff] %v258_v7  }
  0x16 PF: > { %316 = sbr.rel (!%p1355_p3) target bundleno = 30 (0x1e), region = 77  ;;  %s318_s13 = sand.u32 (%p1355_p3), 1, %s1286_s22  }
  0x17   : > { %s1088_s14 = sshll.u32 (%p1355_p3), %s1290_s23, 3  ;;  %s1034_s15 = sshll.u32 (%p1355_p3), %s318_s13, 6 }
  0x18   : > { %s323_s18 = scalar_lea.vmem (%p1355_p3), %s1476_s1, %s1088_s14  ;;  %s320_s19 = scalar_lea.vmem (%p1355_p3), [#allocation3], %s1034_s15 }
  0x19   : > { %v339_v8 = vld [vmem:[%s323_s18] sm:$0xff] (%p1355_p3)   ;;  %v343_v9 = vld [vmem:[%s323_s18 + $0x10] sm:$0xff] (%p1355_p3)  }
  0x1a   : > { %v347_v10 = vld [vmem:[%s323_s18 + $0x20] sm:$0xff] (%p1355_p3)   ;;  %340 = vst [vmem:[%s320_s19] sm:$0xff] (%p1355_p3), %v339_v8   ;;  %344 = vst [vmem:[%s320_s19 + $0x8] sm:$0xff] (%p1355_p3), %v343_v9   ;;  %v351_v11 = vld [vmem:[%s323_s18 + $0x30] sm:$0xff] (%p1355_p3)  }
  0x1b   : > { %348 = vst [vmem:[%s320_s19 + $0x10] sm:$0xff] (%p1355_p3), %v347_v10   ;;  %v355_v12 = vld [vmem:[%s323_s18 + $0x40] sm:$0xff] (%p1355_p3)   ;;  %v359_v13 = vld [vmem:[%s323_s18 + $0x50] sm:$0xff] (%p1355_p3)   ;;  %352 = vst [vmem:[%s320_s19 + $0x18] sm:$0xff] (%p1355_p3), %v351_v11  }
  0x1c   : > { %356 = vst [vmem:[%s320_s19 + $0x20] sm:$0xff] (%p1355_p3), %v355_v12   ;;  %360 = vst [vmem:[%s320_s19 + $0x28] sm:$0xff] (%p1355_p3), %v359_v13   ;;  %v363_v14 = vld [vmem:[%s323_s18 + $0x60] sm:$0xff] (%p1355_p3)   ;;  %v367_v15 = vld [vmem:[%s323_s18 + $0x70] sm:$0xff] (%p1355_p3)  }
  0x1d   : > { %364 = vst [vmem:[%s320_s19 + $0x30] sm:$0xff] %v363_v14   ;;  %368 = vst [vmem:[%s320_s19 + $0x38] sm:$0xff] %v367_v15  }
  0x1e PF: > { %p1037_p5 = scmp.ge.s32.totalorder %s1290_s23, 1  ;;  %p424_p6 = scmp.lt.s32.totalorder %s1290_s23, 3 }
  0x20   : > { %p425_p7 = pnand %p1037_p5, %p424_p6 }
  0x21   : > { %v1251_v16 = vld [vmem:[%s1477_s2] sm:$0x3f] (!%p425_p7)   ;;  %vm575_vm0 = vcmask (!%p425_p7), 1045504   ;;  %s431_s27 = sand.u32 (!%p425_p7), 1, %s1282_s21   ;;  %vm550_vm1 = vcmask (!%p425_p7), 97280   ;;  %v1261_v19 = vld [vmem:[%s1479_s4 + $0x8] sm:$0xff] (!%p425_p7)  }
  0x22   : > { %428 = sbr.rel (%p425_p7) target bundleno = 510 (0x1fe), region = 118  ;;  %v1260_v17 = vld [vmem:[%s1479_s4] sm:$0xff] (!%p425_p7)   ;;  %1226 = vmatprep.subr.msk.bf16.mxu0 (!%p425_p7), %vm575_vm0, %v1251_v16  ;;  %v577_v18 = vsel (!%p425_p7), %vm575_vm0, %v1251_v16, 0  ;;  %s1383_s7 = sshll.u32 (!%p425_p7), %s431_s27, 6  ;;  %v1262_v25 = vld [vmem:[%s1479_s4 + $0x10] sm:$0xff] (!%p425_p7)   ;;  %v1263_v26 = vld [vmem:[%s1479_s4 + $0x18] sm:$0xff] (!%p425_p7)  }
  0x23   : > { %1161 = vmatpush3.bf16.msra.mxu0 (!%p425_p7), %v577_v18  ;;  %1210 = vmatprep.subr.bf16.mxu1 (!%p425_p7), %v1260_v17  ;;  %s1389_s10 = scalar_lea.vmem (!%p425_p7), [#allocation2], %s1383_s7  ;;  %v1264_v27 = vld [vmem:[%s1479_s4 + $0x20] sm:$0xff] (!%p425_p7)   ;;  %v1265_v30 = vld [vmem:[%s1479_s4 + $0x28] sm:$0xff] (!%p425_p7)   ;;  %v1266_v32 = vld [vmem:[%s1479_s4 + $0x30] sm:$0xff] (!%p425_p7)   ;;  %s1429_s30 = scalar_lea.vmem (!%p425_p7), [#allocation3], %s1383_s7 }
  0x24   : > { %v1252_v20 = vld [vmem:[%s1389_s10] sm:$0xff] (!%p425_p7)   ;;  %1178 = vmatprep.subr.bf16.mxu0 (!%p425_p7), %v1260_v17  ;;  %1218 = vmatpush3.bf16.msra.mxu1 (!%p425_p7), %v1260_v17  ;;  %v1253_v21 = vld [vmem:[%s1389_s10 + $0x8] sm:$0xff] (!%p425_p7)   ;;  %v1254_v22 = vld [vmem:[%s1389_s10 + $0x10] sm:$0xff] (!%p425_p7)   ;;  %s1040_s7 = sshll.u32 (!%p425_p7), %s1027_s24, 1 }
  0x25   : > { %1211 = vmatprep.subr.bf16.mxu1 (!%p425_p7), %v1261_v19  ;;  %1162 = vmatprep.mubr.msk.bf16.mxu0 (!%p425_p7), %vm550_vm1, %v1252_v20  ;;  %v1255_v23 = vld [vmem:[%s1389_s10 + $0x18] sm:$0xff] (!%p425_p7)   ;;  %v1256_v24 = vld [vmem:[%s1389_s10 + $0x20] sm:$0xff] (!%p425_p7)   ;;  %v1257_v28 = vld [vmem:[%s1389_s10 + $0x28] sm:$0xff] (!%p425_p7)   ;;  %p474_p8 = scmp.lt.s32.totalorder (!%p425_p7), %s1040_s7, 3 }
  0x26   : > { %1163 = vmatmul.mubr.msk.bf16.vlgmr.msra.gmra.mrb[0].mxu0 (!%p425_p7), %vm550_vm1, %v1253_v21  ;;  %v1258_v29 = vld [vmem:[%s1389_s10 + $0x30] sm:$0xff] (!%p425_p7)   ;;  %v1259_v31 = vld [vmem:[%s1389_s10 + $0x38] sm:$0xff] (!%p425_p7)   ;;  %v1042_v34 = vld [vmem:[%s1478_s3] ss:$0 sm:$0xff] (!%p425_p7) }
  0x27   : > { %1166 = vmatprep.mubr.msk.bf16.mxu0 (!%p425_p7), %vm550_vm1, %v1254_v22  ;;  %1179 = vmatpush3.bf16.msra.mxu0 (!%p425_p7), %v1260_v17  ;;  %v1267_v33 = vld [vmem:[%s1479_s4 + $0x38] sm:$0xff] (!%p425_p7)  }
  0x28   : > { %1180 = vmatprep.subr.bf16.mxu0 (!%p425_p7), %v1261_v19  ;;  %1219 = vmatpush3.bf16.msra.mxu1 (!%p425_p7), %v1261_v19 }
  0x29   : > { %1212 = vmatprep.subr.bf16.mxu1 %v1262_v25  ;;  %s1487_s7 = smov (!%p474_p8, %s1040_s7), 3 }
  0x2a   : > { %s1041_s23 = sshll.u32 %s1487_s7, 2 }
  0x2b   : > { %1181 = vmatpush3.bf16.msra.mxu0 %v1261_v19  ;;  %s477_s21 = scalar_lea.vmem %s1481_s6, %s1041_s23 }
  0x2c   : > { %1182 = vmatprep.subr.bf16.mxu0 %v1262_v25  ;;  %1220 = vmatpush3.bf16.msra.mxu1 %v1262_v25 }
  0x2d   : > { %1213 = vmatprep.subr.bf16.mxu1 %v1263_v26 }
  0x2e   : > { %1167 = vmatmul.mubr.msk.bf16.gmra.mrb[4].mxu0 %vm550_vm1, %v1255_v23 }
  0x2f   : > { %1170 = vmatprep.mubr.msk.bf16.mxu0 %vm550_vm1, %v1256_v24  ;;  %1183 = vmatpush3.bf16.msra.mxu0 %v1262_v25 }
  0x30   : > { %1184 = vmatprep.subr.bf16.mxu0 %v1263_v26  ;;  %1221 = vmatpush3.bf16.msra.mxu1 %v1263_v26 }
  0x31   : > { %1214 = vmatprep.subr.bf16.mxu1 %v1264_v27 }
  0x33   : > { %1185 = vmatpush3.bf16.msra.mxu0 %v1263_v26 }
  0x34   : > { %1186 = vmatprep.subr.bf16.mxu0 %v1264_v27  ;;  %1222 = vmatpush3.bf16.msra.mxu1 %v1264_v27 }
  0x35   : > { %1215 = vmatprep.subr.bf16.mxu1 %v1265_v30 }
  0x36   : > { %1171 = vmatmul.mubr.msk.bf16.gmra.mrb[8].mxu0 %vm550_vm1, %v1257_v28  ;;  %v1092_v28 = vld [vmem:[%s1429_s30] sm:$0xff]  }
  0x37   : > { %1174 = vmatprep.mubr.msk.bf16.mxu0 %vm550_vm1, %v1258_v29  ;;  %1187 = vmatpush3.bf16.msra.mxu0 %v1264_v27  ;;  %v1128_v27 = vld [vmem:[%s1429_s30 + $0x8] sm:$0xff]   ;;  %v1436_v29 = vld [vmem:[%s1480_s5] ss:$0 sm:$0xff] }
  0x38   : > { %1188 = vmatprep.subr.bf16.mxu0 %v1265_v30  ;;  %1223 = vmatpush3.bf16.msra.mxu1 %v1265_v30 }
  0x39   : > { %1216 = vmatprep.subr.bf16.mxu1 %v1266_v32 }
  0x3b   : > { %1189 = vmatpush3.bf16.msra.mxu0 %v1265_v30  ;;  %v1097_v30 = vunpack.c.l.bf16 %v1128_v27 }
  0x3c   : > { %1190 = vmatprep.subr.bf16.mxu0 %v1266_v32  ;;  %1224 = vmatpush3.bf16.msra.mxu1 %v1266_v32 }
  0x3d   : > { %1217 = vmatprep.subr.bf16.mxu1 %v1267_v33 }
  0x3e   : > { %1175 = vmatmul.mubr.msk.bf16.gmra.mrb[12].mxu0 %vm550_vm1, %v1259_v31 }
  0x3f   : > { %1191 = vmatpush3.bf16.msra.mxu0 %v1266_v32  ;;  %v1093_v32 = vunpack.c.l.bf16 %v1092_v28 }
  0x40   : > { %1192 = vmatprep.subr.bf16.mxu0 %v1267_v33  ;;  %1225 = vmatpush3.bf16.msra.mxu1 %v1267_v33 }
  0x43   : > { %1193 = vmatpush3.bf16.msra.mxu0 %v1267_v33 }
  0xf9   : > { %v1164_v35 = vpop.f32.mrb[0].mxu0 }
  0xfa   : > { %v622_v36 = vadd.f32 %v1164_v35, %v1042_v34  ;;  %v613_v37 = vpop.f32.mrb[1].mxu0  ;;  %v1098_v35 = vunpack.c.h.bf16 %v1128_v27 }
  0xfb   : > { %v614_v38 = vadd.f32 %v1042_v34, %v613_v37  ;;  %v1165_v39 = vpop.f32.mrb[2].mxu0 }
  0xfc   : > { %v625_v40 = vadd.f32 %v1165_v39, %v1042_v34  ;;  %v616_v41 = vpop.f32.mrb[3].mxu0  ;;  %v678_v43 = vmax.f32 %v622_v36, 0.0 }
  0xfd   : > { %v617_v42 = vadd.f32 %v1042_v34, %v616_v41  ;;  %v676_v45 = vmax.f32 %v614_v38, 0.0  ;;  %v1094_v38 = vunpack.c.h.bf16 %v1092_v28 }
  0xfe   : > { %v679_v44 = vmax.f32 %v625_v40, 0.0 }
  0xff   : > { %v677_v46 = vmax.f32 %v617_v42, 0.0 }
 0x100   : > { %v693_v47 = vpack.c.bf16 %v679_v44, %v678_v43 }
 0x101   : > { %v692_v48 = vpack.c.bf16 %v677_v46, %v676_v45  ;;  %v1168_v49 = vpop.f32.mrb[4].mxu0  ;;  %v1129_v45 = vld [vmem:[%s1429_s30 + $0x10] sm:$0xff]  }
 0x102   : > { %v638_v50 = vadd.f32 %v1168_v49, %v1042_v34  ;;  %v629_v51 = vpop.f32.mrb[5].mxu0 }
 0x103   : > { %v630_v52 = vadd.f32 %v1042_v34, %v629_v51  ;;  %v1169_v53 = vpop.f32.mrb[6].mxu0  ;;  %1194 = vmatprep.mubr.bf16.mxu0 %v692_v48  ;;  %v1130_v48 = vld [vmem:[%s1429_s30 + $0x18] sm:$0xff]   ;;  %v1101_v51 = vunpack.c.l.bf16 %v1129_v45 }
 0x104   : > { %v641_v54 = vadd.f32 %v1169_v53, %v1042_v34  ;;  %v632_v55 = vpop.f32.mrb[7].mxu0  ;;  %1195 = vmatmul.mubr.bf16.vlgmr.msra.gmra.mrb[16].mxu0 %v693_v47  ;;  %v682_v57 = vmax.f32 %v638_v50, 0.0 }
 0x105   : > { %v633_v56 = vadd.f32 %v1042_v34, %v632_v55  ;;  %v680_v59 = vmax.f32 %v630_v52, 0.0 }
 0x106   : > { %v683_v58 = vmax.f32 %v641_v54, 0.0  ;;  %v1105_v54 = vunpack.c.l.bf16 %v1130_v48 }
 0x107   : > { %v681_v60 = vmax.f32 %v633_v56, 0.0 }
 0x108   : > { %v695_v61 = vpack.c.bf16 %v683_v58, %v682_v57  ;;  %v1102_v57 = vunpack.c.h.bf16 %v1129_v45 }
 0x109   : > { %v1172_v62 = vpop.f32.mrb[8].mxu0  ;;  %v694_v63 = vpack.c.bf16 %v681_v60, %v680_v59 }
 0x10a   : > { %v654_v0 = vadd.f32 %v1172_v62, %v1042_v34  ;;  %v645_v1 = vpop.f32.mrb[9].mxu0 }
 0x10b   : > { %v646_v2 = vadd.f32 %v1042_v34, %v645_v1  ;;  %v1173_v3 = vpop.f32.mrb[10].mxu0  ;;  %1198 = vmatprep.mubr.bf16.mxu1 %v694_v63  ;;  %v1131_v63 = vld [vmem:[%s1429_s30 + $0x20] sm:$0xff]  }
 0x10c   : > { %v657_v4 = vadd.f32 %v1173_v3, %v1042_v34  ;;  %v648_v5 = vpop.f32.mrb[11].mxu0  ;;  %1199 = vmatmul.mubr.bf16.vlgmr.msra.gmra.mrb[0].mxu1 %v695_v61  ;;  %v686_v7 = vmax.f32 %v654_v0, 0.0  ;;  %v1106_v61 = vunpack.c.h.bf16 %v1130_v48  ;;  %v1132_v3 = vld [vmem:[%s1429_s30 + $0x28] sm:$0xff]  }
 0x10d   : > { %v649_v6 = vadd.f32 %v1042_v34, %v648_v5  ;;  %v684_v9 = vmax.f32 %v646_v2, 0.0 }
 0x10e   : > { %v687_v8 = vmax.f32 %v657_v4, 0.0 }
 0x10f   : > { %v685_v10 = vmax.f32 %v649_v6, 0.0 }
 0x110   : > { %v697_v11 = vpack.c.bf16 %v687_v8, %v686_v7  ;;  %v1109_v8 = vunpack.c.l.bf16 %v1131_v63 }
 0x111   : > { %v696_v12 = vpack.c.bf16 %v685_v10, %v684_v9  ;;  %v1176_v13 = vpop.f32.mrb[12].mxu0  ;;  %v1113_v9 = vunpack.c.l.bf16 %v1132_v3 }
 0x112   : > { %v670_v14 = vadd.f32 %v1176_v13, %v1042_v34  ;;  %v661_v15 = vpop.f32.mrb[13].mxu0 }
 0x113   : > { %v662_v16 = vadd.f32 %v1042_v34, %v661_v15  ;;  %v1177_v17 = vpop.f32.mrb[14].mxu0  ;;  %1202 = vmatprep.mubr.bf16.mxu1 %v696_v12  ;;  %v1110_v15 = vunpack.c.h.bf16 %v1131_v63 }
 0x114   : > { %v673_v18 = vadd.f32 %v1177_v17, %v1042_v34  ;;  %v664_v19 = vpop.f32.mrb[15].mxu0  ;;  %1203 = vmatmul.mubr.bf16.gmra.mrb[4].mxu1 %v697_v11  ;;  %v690_v21 = vmax.f32 %v670_v14, 0.0 }
 0x115   : > { %v665_v20 = vadd.f32 %v1042_v34, %v664_v19  ;;  %v688_v23 = vmax.f32 %v662_v16, 0.0  ;;  %v1114_v19 = vunpack.c.h.bf16 %v1132_v3 }
 0x116   : > { %v691_v22 = vmax.f32 %v673_v18, 0.0 }
 0x117   : > { %v689_v24 = vmax.f32 %v665_v20, 0.0 }
 0x118   : > { %v699_v25 = vpack.c.bf16 %v691_v22, %v690_v21  ;;  %v1133_v21 = vld [vmem:[%s1429_s30 + $0x30] sm:$0xff]  }
 0x119   : > { %v698_v26 = vpack.c.bf16 %v689_v24, %v688_v23 }
 0x11b   : > { %1206 = vmatprep.mubr.bf16.mxu1 %v698_v26 }
 0x11c   : > { %1207 = vmatmul.mubr.bf16.gmra.mrb[8].mxu1 %v699_v25  ;;  %v1134_v25 = vld [vmem:[%s1429_s30 + $0x38] sm:$0xff]  }
 0x1d7   : > { %v1196_v31 = vpop.f32.mrb[16].mxu0 }
 0x1d8   : > { %v814_v33 = vadd.f32 %v1196_v31, %v1436_v29  ;;  %v805_v34 = vpop.f32.mrb[17].mxu0  ;;  %v1117_v31 = vunpack.c.l.bf16 %v1133_v21 }
 0x1d9   : > { %v806_v36 = vadd.f32 %v1436_v29, %v805_v34  ;;  %v1197_v37 = vpop.f32.mrb[18].mxu0 }
 0x1da   : > { %v879_v39 = vmul.f32 %v1097_v30, %v814_v33  ;;  %v817_v40 = vadd.f32 %v1197_v37, %v1436_v29  ;;  %v808_v41 = vpop.f32.mrb[19].mxu0 }
 0x1db   : > { %v872_v42 = vmul.f32 %v1093_v32, %v806_v36  ;;  %v809_v43 = vadd.f32 %v1436_v29, %v808_v41  ;;  %v1121_v32 = vunpack.c.l.bf16 %v1134_v25 }
 0x1dc   : > { %v880_v44 = vmul.f32 %v1098_v35, %v817_v40 }
 0x1dd   : > { %v881_v46 = vadd.f32 %v879_v39, %v872_v42  ;;  %v873_v47 = vmul.f32 %v1094_v38, %v809_v43  ;;  %v1118_v38 = vunpack.c.h.bf16 %v1133_v21  ;;  %v1122_v42 = vunpack.c.h.bf16 %v1134_v25 }
 0x1df   : > { %v882_v49 = vadd.f32 %v880_v44, %v873_v47  ;;  %v1200_v50 = vpop.f32.mrb[0].mxu1 }
 0x1e0   : > { %v821_v52 = vpop.f32.mrb[1].mxu1  ;;  %v830_v53 = vadd.f32 %v1200_v50, %v1436_v29 }
 0x1e1   : > { %v822_v55 = vadd.f32 %v1436_v29, %v821_v52  ;;  %v1201_v56 = vpop.f32.mrb[2].mxu1 }
 0x1e2   : > { %v824_v58 = vpop.f32.mrb[3].mxu1  ;;  %v833_v60 = vadd.f32 %v1201_v56, %v1436_v29  ;;  %v897_v0 = vmul.f32 %v1105_v54, %v830_v53 }
 0x1e3   : > { %v888_v59 = vmul.f32 %v1101_v51, %v822_v55  ;;  %v825_v62 = vadd.f32 %v1436_v29, %v824_v58 }
 0x1e4   : > { %v898_v4 = vmul.f32 %v1106_v61, %v833_v60 }
 0x1e5   : > { %v890_v1 = vadd.f32 %v888_v59, %v881_v46  ;;  %v889_v2 = vmul.f32 %v1102_v57, %v825_v62 }
 0x1e7   : > { %v891_v5 = vadd.f32 %v889_v2, %v882_v49  ;;  %v1204_v6 = vpop.f32.mrb[4].mxu1  ;;  %v899_v7 = vadd.f32 %v897_v0, %v890_v1 }
 0x1e8   : > { %v837_v10 = vpop.f32.mrb[5].mxu1  ;;  %v846_v11 = vadd.f32 %v1204_v6, %v1436_v29 }
 0x1e9   : > { %v838_v12 = vadd.f32 %v1436_v29, %v837_v10  ;;  %v1205_v13 = vpop.f32.mrb[6].mxu1  ;;  %v900_v14 = vadd.f32 %v898_v4, %v891_v5 }
 0x1ea   : > { %v840_v16 = vpop.f32.mrb[7].mxu1  ;;  %v849_v18 = vadd.f32 %v1205_v13, %v1436_v29  ;;  %v915_v22 = vmul.f32 %v1113_v9, %v846_v11 }
 0x1eb   : > { %v906_v17 = vmul.f32 %v1109_v8, %v838_v12  ;;  %v841_v20 = vadd.f32 %v1436_v29, %v840_v16 }
 0x1ec   : > { %v916_v26 = vmul.f32 %v1114_v19, %v849_v18 }
 0x1ed   : > { %v908_v23 = vadd.f32 %v906_v17, %v899_v7  ;;  %v907_v24 = vmul.f32 %v1110_v15, %v841_v20 }
 0x1ef   : > { %v909_v27 = vadd.f32 %v907_v24, %v900_v14  ;;  %v1208_v28 = vpop.f32.mrb[8].mxu1  ;;  %v917_v30 = vadd.f32 %v915_v22, %v908_v23 }
 0x1f0   : > { %v853_v33 = vpop.f32.mrb[9].mxu1  ;;  %v862_v34 = vadd.f32 %v1208_v28, %v1436_v29 }
 0x1f1   : > { %v854_v35 = vadd.f32 %v1436_v29, %v853_v33  ;;  %v1209_v36 = vpop.f32.mrb[10].mxu1  ;;  %v918_v37 = vadd.f32 %v916_v26, %v909_v27 }
 0x1f2   : > { %v856_v39 = vpop.f32.mrb[11].mxu1  ;;  %v865_v41 = vadd.f32 %v1209_v36, %v1436_v29  ;;  %v933_v44 = vmul.f32 %v1121_v32, %v862_v34 }
 0x1f3   : > { %v924_v40 = vmul.f32 %v1117_v31, %v854_v35  ;;  %v857_v43 = vadd.f32 %v1436_v29, %v856_v39 }
 0x1f4   : > { %v934_v48 = vmul.f32 %v1122_v42, %v865_v41 }
 0x1f5   : > { %v926_v45 = vadd.f32 %v924_v40, %v917_v30  ;;  %v925_v46 = vmul.f32 %v1118_v38, %v857_v43 }
 0x1f7   : > { %v935_v47 = vadd.f32 %v933_v44, %v926_v45  ;;  %v927_v49 = vadd.f32 %v925_v46, %v918_v37 }
 0x1f9   : > { %v936_v50 = vadd.f32 %v934_v48, %v927_v49 }
 0x1fb   : > { %v1126_v51 = vpack.c.bf16 %v936_v50, %v935_v47 }
 0x1fd   : > { %1127 = vst [vmem:[%s477_s21] sm:$0xff] %v1126_v51  }
 0x1fe PF: > { %p13_p9 = scmp.ge.s32.totalorder %s1344_s25, 4   ;;  %s1483_s21 = smov %s1286_s22 }
 0x1ff   : > { %s1484_s22 = smov %s1353_s28  ;;  %s1485_s23 = smov %s1344_s25 }
 0x200   :  { %15 = sbr.rel (!%p13_p9) target bundleno = 2 (0x2), region = 176 }

</bundles_post_ra>
